<compile_context>
chip_gen: v7x
topology: tpu7x:2x2x1
jax: 0.10.0
libtpu: 0.0.40
codegen_flags: <defaults>
</compile_context>

<pallas_src>
import math
from functools import lru_cache

import jax
import jax.numpy as jnp
from jax.experimental import pallas as pl
from jax.experimental.pallas import tpu as pltpu

# ---------------- module hyper-parameters (from ToLogMelSpec.__init__) -------
SAMPLE_RATE = 16000
N_FFT = 400
HOP_LENGTH = 160
N_MELS = 64
N_FREQ = N_FFT // 2 + 1          # 201 (onesided rFFT bins)
AMIN = 1e-10                     # torchaudio AmplitudeToDB amin (ref=1 -> db_multiplier=0)

# ---------------- TPU tiling parameters --------------------------------------
TILE_F = 128                     # frames per grid step (MXU M dimension, pipelined)
N_FFT_P = 512                    # n_fft padded to lane multiple
N_FREQ_P = 256                   # onesided bins padded to lane multiple
N_SPEC_P = 2 * N_FREQ_P          # fused (re | im) output width of the DFT matmul
N_MELS_P = 128                   # lane-dense output slab (sliced to 64 in wrapper)


def _round_up(x, m):
    return ((x + m - 1) // m) * m


# ---------------- deterministic "parameters" (window / DFT / mel fbank) ------
def melscale_fbanks_htk(n_freqs, f_min, f_max, n_mels, sample_rate):
    # matches torchaudio.functional.melscale_fbanks(norm=None, mel_scale="htk")
    all_freqs = jnp.linspace(0.0, sample_rate // 2, n_freqs)

    def hz_to_mel(f):
        return 2595.0 * jnp.log10(1.0 + f / 700.0)

    def mel_to_hz(m):
        return 700.0 * (jnp.power(10.0, m / 2595.0) - 1.0)

    m_min = hz_to_mel(jnp.asarray(f_min, jnp.float32))
    m_max = hz_to_mel(jnp.asarray(f_max, jnp.float32))
    m_pts = jnp.linspace(m_min, m_max, n_mels + 2)
    f_pts = mel_to_hz(m_pts)
    f_diff = f_pts[1:] - f_pts[:-1]                           # [n_mels+1]
    slopes = f_pts[None, :] - all_freqs[:, None]              # [n_freqs, n_mels+2]
    down = -slopes[:, :-2] / f_diff[:-1]
    up = slopes[:, 2:] / f_diff[1:]
    fb = jnp.maximum(0.0, jnp.minimum(down, up))
    return fb.astype(jnp.float32)                             # [n_freqs, n_mels]


@lru_cache(maxsize=1)
def _constants():
    """Hoisted, computed-once weights: fused windowed-DFT matrix and mel fbank."""
    # periodic Hann window (torch.hann_window default), folded into the DFT rows
    n = jnp.arange(N_FFT, dtype=jnp.float32)
    window = 0.5 - 0.5 * jnp.cos(2.0 * jnp.pi * n / N_FFT)

    ni = jnp.arange(N_FFT, dtype=jnp.int32)[:, None]
    k = jnp.arange(N_FREQ, dtype=jnp.int32)[None, :]
    phase = ((ni * k) % N_FFT).astype(jnp.float32) * (2.0 * math.pi / N_FFT)
    cos_m = jnp.cos(phase) * window[:, None]                  # [n_fft, n_freq]
    sin_m = -jnp.sin(phase) * window[:, None]

    # fused RHS [N_FFT_P, 2*N_FREQ_P]: one MXU pass yields (re | im)
    cos_p = jnp.pad(cos_m, ((0, N_FFT_P - N_FFT), (0, N_FREQ_P - N_FREQ)))
    sin_p = jnp.pad(sin_m, ((0, N_FFT_P - N_FFT), (0, N_FREQ_P - N_FREQ)))
    w_fused = jnp.concatenate([cos_p, sin_p], axis=1)         # [512, 512]

    fb = melscale_fbanks_htk(N_FREQ, 0.0, SAMPLE_RATE / 2, N_MELS, SAMPLE_RATE)
    fb_p = jnp.pad(fb, ((0, N_FREQ_P - N_FREQ), (0, N_MELS_P - N_MELS)))  # [256, 128]
    return w_fused, fb_p


# ---------------- Pallas kernel: fused DFT matmul + power + mel + dB ---------
def logmel_kernel(frames_ref, w_ref, fb_ref, out_ref):
    f = frames_ref[...]                                       # (TILE_F, 512)
    # single wide matmul: columns [0:256) = real, [256:512) = imag
    spec = jnp.dot(f, w_ref[...], preferred_element_type=jnp.float32)
    re = spec[:, :N_FREQ_P]
    im = spec[:, N_FREQ_P:]
    power = re * re + im * im                                 # power spectrogram (power=2.0)
    mel = jnp.dot(power, fb_ref[...], preferred_element_type=jnp.float32)  # (TILE_F, 128)
    # AmplitudeToDB (stype="power", top_db=None, ref=1.0): 10*log10(clamp(x, amin))
    out_ref[...] = 10.0 * jnp.log10(jnp.maximum(mel, AMIN))


# ---------------- framing glue (no gather: hop matrix + slices + concat) -----
def _frame_waveform(wav, n_frames):
    pad = N_FFT // 2
    padded = jnp.pad(wav, (pad, pad), mode="reflect")         # center=True, reflect
    n_hops = max(n_frames + 2,
                 _round_up(padded.shape[0], HOP_LENGTH) // HOP_LENGTH)
    padded = jnp.pad(padded, (0, n_hops * HOP_LENGTH - padded.shape[0]))
    hops = padded.reshape(n_hops, HOP_LENGTH)                 # [n_hops, 160]
    tail = N_FFT - 2 * HOP_LENGTH                             # 80
    # frames[t] = padded[t*160 : t*160 + 400] = hops[t] | hops[t+1] | hops[t+2][:80]
    frames = jnp.concatenate(
        [hops[0:n_frames], hops[1:n_frames + 1], hops[2:n_frames + 2, :tail]],
        axis=1)                                               # [n_frames, 400]
    return frames


@jax.jit
def to_log_mel_spec(waveform):
    """waveform: (1, num_samples) float32  ->  (n_frames, n_mels) float32."""
    wav = waveform.reshape(-1).astype(jnp.float32)            # squeeze channel dim
    num_samples = wav.shape[0]
    n_frames = 1 + num_samples // HOP_LENGTH

    # TODO(synk): stream the raw waveform via manual DMA + in-kernel framing to
    # avoid the ~2.5x frame duplication in HBM for very long clips.
    frames = _frame_waveform(wav, n_frames)                   # [n_frames, n_fft]

    Fp = _round_up(n_frames, TILE_F)
    frames_p = jnp.pad(frames, ((0, Fp - n_frames), (0, N_FFT_P - N_FFT)))

    w_fused, fb_p = _constants()
    # NOTE: inputs kept f32 (with f32 accumulate) for parity with the PyTorch
    # f32 STFT; casting frames/weights to bf16 is a further ~2-4x MXU option.

    out = pl.pallas_call(
        logmel_kernel,
        out_shape=jax.ShapeDtypeStruct((Fp, N_MELS_P), jnp.float32),
        grid_spec=pltpu.PrefetchScalarGridSpec(
            num_scalar_prefetch=0,
            grid=(Fp // TILE_F,),
            in_specs=[
                # frame tiles stream through the pipeline (double-buffered)
                pl.BlockSpec((TILE_F, N_FFT_P), lambda i: (i, 0)),
                # DFT / mel weights stay resident across the grid
                pl.BlockSpec((N_FFT_P, N_SPEC_P), lambda i: (0, 0)),
                pl.BlockSpec((N_FREQ_P, N_MELS_P), lambda i: (0, 0)),
            ],
            out_specs=pl.BlockSpec((TILE_F, N_MELS_P), lambda i: (i, 0)),
        ),
        compiler_params=pltpu.CompilerParams(
            dimension_semantics=("parallel",),                # shards frame tiles across TCs
        ),
    )(frames_p, w_fused, fb_p)

    return out[:n_frames, :N_MELS]                            # (time, n_mels)


if __name__ == "__main__":
    key = jax.random.PRNGKey(0)
    # 0.1 s of mono audio at 16 kHz -> 1600 samples -> 11 frames of 64 mel bins
    waveform = jax.random.normal(key, (1, 1600), dtype=jnp.float32)

    mel_db = to_log_mel_spec(waveform)
    jax.block_until_ready(mel_db)

    assert mel_db.shape == (1 + 1600 // HOP_LENGTH, N_MELS), mel_db.shape
    assert bool(jnp.all(jnp.isfinite(mel_db)))
    print("KERNEL_OK")
</pallas_src>

<mosaic_0001>
module attributes {stable_mosaic.version = 11 : i64} {
  func.func @logmel_kernel(%arg0: i32, %arg1: memref<128x512xf32, #tpu.memory_space<vmem>>, %arg2: memref<512x512xf32, #tpu.memory_space<vmem>>, %arg3: memref<256x128xf32, #tpu.memory_space<vmem>>, %arg4: memref<128x128xf32, #tpu.memory_space<vmem>>) attributes {dimension_semantics = [#tpu.dimension_semantics<parallel>], iteration_bounds = array<i64: 1>, scalar_prefetch = 0 : i64, scratch_operands = 0 : i64, tpu.core_type = #tpu.core_type<tc>, window_params = [{transform_indices = @transform_0, window_bounds = array<i64: 128, 512>}, {pipeline_mode = #tpu.pipeline_mode<synchronous>, transform_indices = @transform_1, window_bounds = array<i64: 512, 512>}, {pipeline_mode = #tpu.pipeline_mode<synchronous>, transform_indices = @transform_2, window_bounds = array<i64: 256, 128>}, {transform_indices = @transform_3, window_bounds = array<i64: 128, 128>}]} {
    %c0 = arith.constant 0 : index
    %c0_0 = arith.constant 0 : index
    %0 = vector.load %arg1[%c0, %c0_0] : memref<128x512xf32, #tpu.memory_space<vmem>>, vector<128x512xf32>
    %c0_1 = arith.constant 0 : index
    %c0_2 = arith.constant 0 : index
    %1 = vector.load %arg2[%c0_1, %c0_2] : memref<512x512xf32, #tpu.memory_space<vmem>>, vector<512x512xf32>
    %cst = arith.constant dense<0.000000e+00> : vector<128x512xf32>
    %2 = tpu.matmul %0, %1, %cst {dimension_numbers = #tpu.dot_dimension_numbers<[1], [0], [0], [1], [0, 0, 1, 1], [], []>} : vector<128x512xf32>, vector<512x512xf32>, vector<128x512xf32> -> vector<128x512xf32>
    %3 = vector.extract_strided_slice %2 {offsets = [0, 0], sizes = [128, 256], strides = [1, 1]} : vector<128x512xf32> to vector<128x256xf32>
    %4 = vector.extract_strided_slice %2 {offsets = [0, 256], sizes = [128, 256], strides = [1, 1]} : vector<128x512xf32> to vector<128x256xf32>
    %5 = arith.mulf %3, %3 : vector<128x256xf32>
    %6 = arith.mulf %4, %4 : vector<128x256xf32>
    %7 = arith.addf %5, %6 : vector<128x256xf32>
    %c0_3 = arith.constant 0 : index
    %c0_4 = arith.constant 0 : index
    %8 = vector.load %arg3[%c0_3, %c0_4] : memref<256x128xf32, #tpu.memory_space<vmem>>, vector<256x128xf32>
    %cst_5 = arith.constant dense<0.000000e+00> : vector<128x128xf32>
    %9 = tpu.matmul %7, %8, %cst_5 {dimension_numbers = #tpu.dot_dimension_numbers<[1], [0], [0], [1], [0, 0, 1, 1], [], []>} : vector<128x256xf32>, vector<256x128xf32>, vector<128x128xf32> -> vector<128x128xf32>
    %cst_6 = arith.constant 1.000000e-10 : f32
    %10 = vector.broadcast %cst_6 : f32 to vector<128x128xf32>
    %11 = arith.maximumf %9, %10 : vector<128x128xf32>
    %12 = math.log %11 : vector<128x128xf32>
    %cst_7 = arith.constant 0.434294492 : f32
    %13 = vector.broadcast %cst_7 : f32 to vector<128x128xf32>
    %14 = arith.mulf %12, %13 : vector<128x128xf32>
    %cst_8 = arith.constant 1.000000e+01 : f32
    %15 = vector.broadcast %cst_8 : f32 to vector<128x128xf32>
    %16 = arith.mulf %15, %14 : vector<128x128xf32>
    %c0_9 = arith.constant 0 : index
    %c0_10 = arith.constant 0 : index
    %17 = vector.load %arg4[%c0_9, %c0_10] : memref<128x128xf32, #tpu.memory_space<vmem>>, vector<128x128xf32>
    tpu.vector_store %arg4[%c0_9, %c0_10], %16 {strides = array<i32>} : memref<128x128xf32, #tpu.memory_space<vmem>>, vector<128x128xf32>,
    return
  }
  func.func @transform_0(%arg0: i32) -> (i32, i32) {
    %c0_i32 = arith.constant 0 : i32
    %c0_i32_0 = arith.constant 0 : i32
    return %arg0, %c0_i32 : i32, i32
  }
  func.func @transform_1(%arg0: i32) -> (i32, i32) {
    %c0_i32 = arith.constant 0 : i32
    %c0_i32_0 = arith.constant 0 : i32
    %c0_i32_1 = arith.constant 0 : i32
    return %c0_i32, %c0_i32_0 : i32, i32
  }
  func.func @transform_2(%arg0: i32) -> (i32, i32) {
    %c0_i32 = arith.constant 0 : i32
    %c0_i32_0 = arith.constant 0 : i32
    %c0_i32_1 = arith.constant 0 : i32
    return %c0_i32, %c0_i32_0 : i32, i32
  }
  func.func @transform_3(%arg0: i32) -> (i32, i32) {
    %c0_i32 = arith.constant 0 : i32
    %c0_i32_0 = arith.constant 0 : i32
    return %arg0, %c0_i32 : i32, i32
  }
}

</mosaic_0001>

<bundles_post_ra>
// kernel: reverse
= control target key start
LH: loop header
LB: loop body
LE: loop exit
PB: predicated region body
PF: predicated region fallthrough
CT: control target
= control target key end

     0   :  { %v2_v0 = vlaneseq  ;;  %s123_s0 = inlined_call_operand.vmem [shape: f32[256], index: 0, kind: input, shape index: {}]   ;;  %s124_s1 = inlined_call_operand.vmem [shape: f32[256], index: 1, kind: output, shape index: {}]  }
   0x2   :  { %v3_v1 = vsub.s32 127, %v2_v0 }
   0x4   :  { %4 = vset.pattern.permute.xlu0 %v3_v1 }
   0x5   :  { %v43_v2 = vld [vmem:[#allocation1] sm:$0x3]  ;;  %v21_v3 = vld [vmem:[%s123_s0] sm:$0x3]  ;;  %v58_v10 = vshrl.u32 %v2_v0, 7 }
   0x6   :  { %44 = vst [vmem:[#allocation0] sm:$0x3] %v43_v2  ;;  %22 = vst [vmem:[#allocation1 + $0x2] sm:$0x3] %v21_v3 }
   0x7   :  { %vm59_vm0 = vcmp.lt.s32.totalorder %v58_v10, 2 }
   0xd   :  { %v46_v4 = vld [vmem:[#allocation0 + $0x7] ss:$-1 sm:$0xff]  ;;  %v40_v5 = vld [vmem:[#allocation1 + $0x2] sm:$0x3] }
   0xe   :  { %v47_v6 = vrot.slane %v46_v4, 6  ;;  %42 = vst [vmem:[#allocation0 + $0x8] sm:$0x3] %v40_v5 }
  0x10   :  { %48 = vperm.xlu0 %4, %v47_v6  }
  0x15   :  { %v53_v7 = vld [vmem:[#allocation0 + $0xf] ss:$-1 sm:$0xff] }
  0x16   :  { %v54_v8 = vrot.slane %v53_v7, 6 }
  0x18   :  { %55 = vperm.xlu0 %4, %v54_v8  }
  0x8f   :  { %v49_v9 = vpop.permute.xlu0 %48 }
  0x90   :  { %50 = vst [vmem:[#allocation2] sm:$0xff] %v49_v9 }
  0x97   :  { %v56_v11 = vpop.permute.xlu0 %55 }
  0x98   :  { %60 = vst.msk [vmem:[#allocation2] sm:$0xff] %vm59_vm0, %v56_v11 }
  0x9f   :  { %v64_v12 = vld [vmem:[#allocation2] sm:$0x3] }
  0xa0   :  { %66 = vst [vmem:[#allocation3] sm:$0x3] %v64_v12 }
  0xa7   :  { %v82_v13 = vld [vmem:[#allocation3] sm:$0x3] }
  0xa8   :  { %83 = vst [vmem:[%s124_s1] sm:$0x3] %v82_v13 }

// kernel: to_log_mel_spec.1
= control target key start
LH: loop header
LB: loop body
LE: loop exit
PB: predicated region body
PF: predicated region fallthrough
CT: control target
= control target key end

     0   :  { %s2955_s1 = inlined_call_operand.vmem [shape: f32[512,512], index: 1, kind: input, shape index: {}]   ;;  %s2956_s0 = inlined_call_operand.vmem [shape: f32[128,512], index: 0, kind: input, shape index: {}]   ;;  %s2957_s2 = inlined_call_operand.vmem [shape: f32[256,128], index: 2, kind: input, shape index: {}]   ;;  %s2958_s3 = inlined_call_operand.vmem [shape: f32[128,128], index: 3, kind: output, shape index: {}]  }
   0x1   :  { %v79_v0 = vld [vmem:[%s2955_s1 + $0x8] sm:$0xff]  ;;  %v81_v2 = vld [vmem:[%s2955_s1 + $0x18] sm:$0xff]  ;;  %v78_v5 = vld [vmem:[%s2955_s1] sm:$0xff] }
   0x2   :  { %v83_v1 = vld [vmem:[%s2955_s1 + $0x28] sm:$0xff]  ;;  %v85_v4 = vld [vmem:[%s2955_s1 + $0x38] sm:$0xff]  ;;  %v82_v6 = vld [vmem:[%s2955_s1 + $0x20] sm:$0xff] }
   0x3   :  { %v1431_v3 = vpack.c.bf16 %v83_v1, %v79_v0  ;;  %v1559_v7 = vpack.c.bf16 %v85_v4, %v81_v2  ;;  %v1433_v8 = vpack.c.bf16 %v82_v6, %v78_v5  ;;  %v80_v9 = vld [vmem:[%s2955_s1 + $0x10] sm:$0xff]  ;;  %v87_v11 = vld [vmem:[%s2955_s1 + $0x48] sm:$0xff]  ;;  %v89_v14 = vld [vmem:[%s2955_s1 + $0x58] sm:$0xff] }
   0x4   :  { %v84_v10 = vld [vmem:[%s2955_s1 + $0x30] sm:$0xff]  ;;  %v91_v13 = vld [vmem:[%s2955_s1 + $0x68] sm:$0xff]  ;;  %v93_v15 = vld [vmem:[%s2955_s1 + $0x78] sm:$0xff] }
   0x5   :  { %1432 = vmatprep.subr.bf16.mxu0 %v1431_v3  ;;  %v1561_v12 = vpack.c.bf16 %v84_v10, %v80_v9  ;;  %1560 = vmatprep.subr.bf16.mxu1 %v1559_v7  ;;  %v1435_v16 = vpack.c.bf16 %v91_v13, %v87_v11  ;;  %v1563_v17 = vpack.c.bf16 %v93_v15, %v89_v14  ;;  %v86_v18 = vld [vmem:[%s2955_s1 + $0x40] sm:$0xff]  ;;  %v88_v20 = vld [vmem:[%s2955_s1 + $0x50] sm:$0xff]  ;;  %v95_v23 = vld [vmem:[%s2955_s1 + $0x88] sm:$0xff] }
   0x6   :  { %1434 = vmatpush1.bf16.msra.mxu0 %v1433_v8  ;;  %v90_v19 = vld [vmem:[%s2955_s1 + $0x60] sm:$0xff]  ;;  %v92_v22 = vld [vmem:[%s2955_s1 + $0x70] sm:$0xff]  ;;  %v99_v24 = vld [vmem:[%s2955_s1 + $0xa8] sm:$0xff] }
   0x7   :  { %1562 = vmatpush1.bf16.msra.mxu1 %v1561_v12  ;;  %v1437_v21 = vpack.c.bf16 %v90_v19, %v86_v18  ;;  %1436 = vmatprep.subr.bf16.mxu0 %v1435_v16  ;;  %v1565_v25 = vpack.c.bf16 %v92_v22, %v88_v20  ;;  %v1439_v26 = vpack.c.bf16 %v99_v24, %v95_v23  ;;  %v97_v27 = vld [vmem:[%s2955_s1 + $0x98] sm:$0xff]  ;;  %v94_v29 = vld [vmem:[%s2955_s1 + $0x80] sm:$0xff]  ;;  %v96_v32 = vld [vmem:[%s2955_s1 + $0x90] sm:$0xff] }
   0x8   :  { %1564 = vmatprep.subr.bf16.mxu1 %v1563_v17  ;;  %v101_v28 = vld [vmem:[%s2955_s1 + $0xb8] sm:$0xff]  ;;  %v98_v31 = vld [vmem:[%s2955_s1 + $0xa0] sm:$0xff]  ;;  %v100_v33 = vld [vmem:[%s2955_s1 + $0xb0] sm:$0xff] }
   0x9   :  { %v1567_v30 = vpack.c.bf16 %v101_v28, %v97_v27  ;;  %v1441_v34 = vpack.c.bf16 %v98_v31, %v94_v29  ;;  %v103_v35 = vld [vmem:[%s2955_s1 + $0xc8] sm:$0xff]  ;;  %v105_v37 = vld [vmem:[%s2955_s1 + $0xd8] sm:$0xff]  ;;  %v1569_v38 = vpack.c.bf16 %v100_v33, %v96_v32  ;;  %v102_v41 = vld [vmem:[%s2955_s1 + $0xc0] sm:$0xff] }
   0xa   :  { %1438 = vmatpush1.bf16.msra.mxu0 %v1437_v21  ;;  %v107_v36 = vld [vmem:[%s2955_s1 + $0xe8] sm:$0xff]  ;;  %v109_v40 = vld [vmem:[%s2955_s1 + $0xf8] sm:$0xff]  ;;  %v106_v42 = vld [vmem:[%s2955_s1 + $0xe0] sm:$0xff] }
   0xb   :  { %1566 = vmatpush1.bf16.msra.mxu1 %v1565_v25  ;;  %1440 = vmatprep.subr.bf16.mxu0 %v1439_v26  ;;  %v1443_v39 = vpack.c.bf16 %v107_v36, %v103_v35  ;;  %v1571_v43 = vpack.c.bf16 %v109_v40, %v105_v37  ;;  %v104_v44 = vld [vmem:[%s2955_s1 + $0xd0] sm:$0xff]  ;;  %v111_v46 = vld [vmem:[%s2955_s1 + $0x108] sm:$0xff]  ;;  %v113_v48 = vld [vmem:[%s2955_s1 + $0x118] sm:$0xff]  ;;  %v1445_v50 = vpack.c.bf16 %v106_v42, %v102_v41 }
   0xc   :  { %1568 = vmatprep.subr.bf16.mxu1 %v1567_v30  ;;  %v108_v45 = vld [vmem:[%s2955_s1 + $0xf0] sm:$0xff]  ;;  %v115_v47 = vld [vmem:[%s2955_s1 + $0x128] sm:$0xff]  ;;  %v117_v49 = vld [vmem:[%s2955_s1 + $0x138] sm:$0xff] }
   0xd   :  { %v1573_v51 = vpack.c.bf16 %v108_v45, %v104_v44  ;;  %v1447_v52 = vpack.c.bf16 %v115_v47, %v111_v46  ;;  %v110_v53 = vld [vmem:[%s2955_s1 + $0x100] sm:$0xff]  ;;  %v112_v55 = vld [vmem:[%s2955_s1 + $0x110] sm:$0xff]  ;;  %v1575_v56 = vpack.c.bf16 %v117_v49, %v113_v48  ;;  %v119_v58 = vld [vmem:[%s2955_s1 + $0x148] sm:$0xff] }
   0xe   :  { %1442 = vmatpush1.bf16.msra.mxu0 %v1441_v34  ;;  %v114_v54 = vld [vmem:[%s2955_s1 + $0x120] sm:$0xff]  ;;  %v116_v57 = vld [vmem:[%s2955_s1 + $0x130] sm:$0xff]  ;;  %v123_v59 = vld [vmem:[%s2955_s1 + $0x168] sm:$0xff] }
   0xf   :  { %1570 = vmatpush1.bf16.msra.mxu1 %v1569_v38  ;;  %1444 = vmatprep.subr.bf16.mxu0 %v1443_v39  ;;  %v121_v60 = vld [vmem:[%s2955_s1 + $0x158] sm:$0xff]  ;;  %v1449_v62 = vpack.c.bf16 %v114_v54, %v110_v53  ;;  %v1577_v63 = vpack.c.bf16 %v116_v57, %v112_v55  ;;  %v1451_v0 = vpack.c.bf16 %v123_v59, %v119_v58  ;;  %v118_v1 = vld [vmem:[%s2955_s1 + $0x140] sm:$0xff]  ;;  %v120_v3 = vld [vmem:[%s2955_s1 + $0x150] sm:$0xff] }
  0x10   :  { %1572 = vmatprep.subr.bf16.mxu1 %v1571_v43  ;;  %v125_v61 = vld [vmem:[%s2955_s1 + $0x178] sm:$0xff]  ;;  %v122_v2 = vld [vmem:[%s2955_s1 + $0x160] sm:$0xff]  ;;  %v124_v5 = vld [vmem:[%s2955_s1 + $0x170] sm:$0xff] }
  0x11   :  { %v1579_v4 = vpack.c.bf16 %v125_v61, %v121_v60  ;;  %v127_v6 = vld [vmem:[%s2955_s1 + $0x188] sm:$0xff]  ;;  %v129_v8 = vld [vmem:[%s2955_s1 + $0x198] sm:$0xff]  ;;  %v1453_v10 = vpack.c.bf16 %v122_v2, %v118_v1  ;;  %v1581_v11 = vpack.c.bf16 %v124_v5, %v120_v3  ;;  %v126_v13 = vld [vmem:[%s2955_s1 + $0x180] sm:$0xff] }
  0x12   :  { %1446 = vmatpush1.bf16.msra.mxu0 %v1445_v50  ;;  %v131_v7 = vld [vmem:[%s2955_s1 + $0x1a8] sm:$0xff]  ;;  %v133_v9 = vld [vmem:[%s2955_s1 + $0x1b8] sm:$0xff]  ;;  %v130_v14 = vld [vmem:[%s2955_s1 + $0x1a0] sm:$0xff] }
  0x13   :  { %1574 = vmatpush1.bf16.msra.mxu1 %v1573_v51  ;;  %1448 = vmatprep.subr.bf16.mxu0 %v1447_v52  ;;  %v1455_v12 = vpack.c.bf16 %v131_v7, %v127_v6  ;;  %v128_v15 = vld [vmem:[%s2955_s1 + $0x190] sm:$0xff]  ;;  %v1583_v16 = vpack.c.bf16 %v133_v9, %v129_v8  ;;  %v135_v18 = vld [vmem:[%s2955_s1 + $0x1c8] sm:$0xff]  ;;  %v137_v20 = vld [vmem:[%s2955_s1 + $0x1d8] sm:$0xff]  ;;  %v1457_v22 = vpack.c.bf16 %v130_v14, %v126_v13 }
  0x14   :  { %1576 = vmatprep.subr.bf16.mxu1 %v1575_v56  ;;  %v132_v17 = vld [vmem:[%s2955_s1 + $0x1b0] sm:$0xff]  ;;  %v139_v19 = vld [vmem:[%s2955_s1 + $0x1e8] sm:$0xff]  ;;  %v141_v21 = vld [vmem:[%s2955_s1 + $0x1f8] sm:$0xff] }
  0x15   :  { %v1585_v23 = vpack.c.bf16 %v132_v17, %v128_v15  ;;  %v1459_v24 = vpack.c.bf16 %v139_v19, %v135_v18  ;;  %v134_v25 = vld [vmem:[%s2955_s1 + $0x1c0] sm:$0xff]  ;;  %v136_v27 = vld [vmem:[%s2955_s1 + $0x1d0] sm:$0xff]  ;;  %v1587_v28 = vpack.c.bf16 %v141_v21, %v137_v20  ;;  %v143_v30 = vld [vmem:[%s2955_s1 + $0x208] sm:$0xff] }
  0x16   :  { %1450 = vmatpush1.bf16.msra.mxu0 %v1449_v62  ;;  %v138_v26 = vld [vmem:[%s2955_s1 + $0x1e0] sm:$0xff]  ;;  %v140_v29 = vld [vmem:[%s2955_s1 + $0x1f0] sm:$0xff]  ;;  %v147_v31 = vld [vmem:[%s2955_s1 + $0x228] sm:$0xff] }
  0x17   :  { %1578 = vmatpush1.bf16.msra.mxu1 %v1577_v63  ;;  %1452 = vmatprep.subr.bf16.mxu0 %v1451_v0  ;;  %v145_v32 = vld [vmem:[%s2955_s1 + $0x218] sm:$0xff]  ;;  %v1461_v34 = vpack.c.bf16 %v138_v26, %v134_v25  ;;  %v1589_v35 = vpack.c.bf16 %v140_v29, %v136_v27  ;;  %v1463_v36 = vpack.c.bf16 %v147_v31, %v143_v30  ;;  %v142_v37 = vld [vmem:[%s2955_s1 + $0x200] sm:$0xff]  ;;  %v144_v39 = vld [vmem:[%s2955_s1 + $0x210] sm:$0xff] }
  0x18   :  { %1580 = vmatprep.subr.bf16.mxu1 %v1579_v4  ;;  %v149_v33 = vld [vmem:[%s2955_s1 + $0x238] sm:$0xff]  ;;  %v146_v38 = vld [vmem:[%s2955_s1 + $0x220] sm:$0xff]  ;;  %v148_v41 = vld [vmem:[%s2955_s1 + $0x230] sm:$0xff] }
  0x19   :  { %v1591_v40 = vpack.c.bf16 %v149_v33, %v145_v32  ;;  %v151_v42 = vld [vmem:[%s2955_s1 + $0x248] sm:$0xff]  ;;  %v153_v44 = vld [vmem:[%s2955_s1 + $0x258] sm:$0xff]  ;;  %v1465_v46 = vpack.c.bf16 %v146_v38, %v142_v37  ;;  %v1593_v47 = vpack.c.bf16 %v148_v41, %v144_v39  ;;  %v150_v49 = vld [vmem:[%s2955_s1 + $0x240] sm:$0xff] }
  0x1a   :  { %1454 = vmatpush1.bf16.msra.mxu0 %v1453_v10  ;;  %v155_v43 = vld [vmem:[%s2955_s1 + $0x268] sm:$0xff]  ;;  %v157_v45 = vld [vmem:[%s2955_s1 + $0x278] sm:$0xff]  ;;  %v154_v50 = vld [vmem:[%s2955_s1 + $0x260] sm:$0xff] }
  0x1b   :  { %1582 = vmatpush1.bf16.msra.mxu1 %v1581_v11  ;;  %1456 = vmatprep.subr.bf16.mxu0 %v1455_v12  ;;  %v1467_v48 = vpack.c.bf16 %v155_v43, %v151_v42  ;;  %v152_v51 = vld [vmem:[%s2955_s1 + $0x250] sm:$0xff]  ;;  %v1595_v52 = vpack.c.bf16 %v157_v45, %v153_v44  ;;  %v159_v54 = vld [vmem:[%s2955_s1 + $0x288] sm:$0xff]  ;;  %v161_v56 = vld [vmem:[%s2955_s1 + $0x298] sm:$0xff]  ;;  %v1469_v58 = vpack.c.bf16 %v154_v50, %v150_v49 }
  0x1c   :  { %1584 = vmatprep.subr.bf16.mxu1 %v1583_v16  ;;  %v156_v53 = vld [vmem:[%s2955_s1 + $0x270] sm:$0xff]  ;;  %v163_v55 = vld [vmem:[%s2955_s1 + $0x2a8] sm:$0xff]  ;;  %v165_v57 = vld [vmem:[%s2955_s1 + $0x2b8] sm:$0xff] }
  0x1d   :  { %v1597_v59 = vpack.c.bf16 %v156_v53, %v152_v51  ;;  %v1471_v60 = vpack.c.bf16 %v163_v55, %v159_v54  ;;  %v158_v61 = vld [vmem:[%s2955_s1 + $0x280] sm:$0xff]  ;;  %v160_v63 = vld [vmem:[%s2955_s1 + $0x290] sm:$0xff]  ;;  %v1599_v0 = vpack.c.bf16 %v165_v57, %v161_v56  ;;  %v167_v2 = vld [vmem:[%s2955_s1 + $0x2c8] sm:$0xff] }
  0x1e   :  { %1458 = vmatpush1.bf16.msra.mxu0 %v1457_v22  ;;  %v162_v62 = vld [vmem:[%s2955_s1 + $0x2a0] sm:$0xff]  ;;  %v164_v1 = vld [vmem:[%s2955_s1 + $0x2b0] sm:$0xff]  ;;  %v171_v3 = vld [vmem:[%s2955_s1 + $0x2e8] sm:$0xff] }
  0x1f   :  { %1586 = vmatpush1.bf16.msra.mxu1 %v1585_v23  ;;  %1460 = vmatprep.subr.bf16.mxu0 %v1459_v24  ;;  %v169_v4 = vld [vmem:[%s2955_s1 + $0x2d8] sm:$0xff]  ;;  %v1473_v6 = vpack.c.bf16 %v162_v62, %v158_v61  ;;  %v166_v7 = vld [vmem:[%s2955_s1 + $0x2c0] sm:$0xff]  ;;  %v1601_v8 = vpack.c.bf16 %v164_v1, %v160_v63  ;;  %v1475_v9 = vpack.c.bf16 %v171_v3, %v167_v2  ;;  %v168_v11 = vld [vmem:[%s2955_s1 + $0x2d0] sm:$0xff] }
  0x20   :  { %1588 = vmatprep.subr.bf16.mxu1 %v1587_v28  ;;  %v173_v5 = vld [vmem:[%s2955_s1 + $0x2f8] sm:$0xff]  ;;  %v170_v10 = vld [vmem:[%s2955_s1 + $0x2e0] sm:$0xff]  ;;  %v172_v12 = vld [vmem:[%s2955_s1 + $0x2f0] sm:$0xff] }
  0x21   :  { %v1603_v13 = vpack.c.bf16 %v173_v5, %v169_v4  ;;  %v175_v14 = vld [vmem:[%s2955_s1 + $0x308] sm:$0xff]  ;;  %v177_v17 = vld [vmem:[%s2955_s1 + $0x318] sm:$0xff]  ;;  %v1477_v19 = vpack.c.bf16 %v170_v10, %v166_v7  ;;  %v1605_v20 = vpack.c.bf16 %v172_v12, %v168_v11  ;;  %v174_v22 = vld [vmem:[%s2955_s1 + $0x300] sm:$0xff] }
  0x22   :  { %1462 = vmatpush1.bf16.msra.mxu0 %v1461_v34  ;;  %v179_v15 = vld [vmem:[%s2955_s1 + $0x328] sm:$0xff]  ;;  %v181_v18 = vld [vmem:[%s2955_s1 + $0x338] sm:$0xff]  ;;  %v178_v23 = vld [vmem:[%s2955_s1 + $0x320] sm:$0xff] }
  0x23   :  { %1590 = vmatpush1.bf16.msra.mxu1 %v1589_v35  ;;  %1464 = vmatprep.subr.bf16.mxu0 %v1463_v36  ;;  %v15_v16 = vld [vmem:[%s2956_s0 + $0x8] sm:$0xff]  ;;  %v1479_v21 = vpack.c.bf16 %v179_v15, %v175_v14  ;;  %v176_v24 = vld [vmem:[%s2955_s1 + $0x310] sm:$0xff]  ;;  %v1607_v25 = vpack.c.bf16 %v181_v18, %v177_v17  ;;  %v185_v29 = vld [vmem:[%s2955_s1 + $0x358] sm:$0xff]  ;;  %v1481_v31 = vpack.c.bf16 %v178_v23, %v174_v22 }
  0x24   :  { %1592 = vmatprep.subr.bf16.mxu1 %v1591_v40  ;;  %398 = vmatprep.mubr.f32.mxu0 %v15_v16  ;;  %v180_v26 = vld [vmem:[%s2955_s1 + $0x330] sm:$0xff]  ;;  %v183_v27 = vld [vmem:[%s2955_s1 + $0x348] sm:$0xff]  ;;  %v189_v30 = vld [vmem:[%s2955_s1 + $0x378] sm:$0xff] }
  0x25   :  { %720 = vmatprep.mubr.f32.mxu1 %v15_v16  ;;  %v187_v28 = vld [vmem:[%s2955_s1 + $0x368] sm:$0xff]  ;;  %v1609_v32 = vpack.c.bf16 %v180_v26, %v176_v24  ;;  %v182_v34 = vld [vmem:[%s2955_s1 + $0x340] sm:$0xff]  ;;  %v184_v36 = vld [vmem:[%s2955_s1 + $0x350] sm:$0xff]  ;;  %v1611_v37 = vpack.c.bf16 %v189_v30, %v185_v29 }
  0x26   :  { %1466 = vmatpush1.bf16.msra.mxu0 %v1465_v46  ;;  %v1483_v33 = vpack.c.bf16 %v187_v28, %v183_v27  ;;  %v186_v35 = vld [vmem:[%s2955_s1 + $0x360] sm:$0xff]  ;;  %v188_v38 = vld [vmem:[%s2955_s1 + $0x370] sm:$0xff]  ;;  %v191_v39 = vld [vmem:[%s2955_s1 + $0x388] sm:$0xff] }
  0x27   :  { %1594 = vmatpush1.bf16.msra.mxu1 %v1593_v47  ;;  %1468 = vmatprep.subr.bf16.mxu0 %v1467_v48  ;;  %v195_v40 = vld [vmem:[%s2955_s1 + $0x3a8] sm:$0xff]  ;;  %v193_v41 = vld [vmem:[%s2955_s1 + $0x398] sm:$0xff]  ;;  %v1485_v43 = vpack.c.bf16 %v186_v35, %v182_v34  ;;  %v1613_v44 = vpack.c.bf16 %v188_v38, %v184_v36  ;;  %v190_v46 = vld [vmem:[%s2955_s1 + $0x380] sm:$0xff] }
  0x28   :  { %1596 = vmatprep.subr.bf16.mxu1 %v1595_v52  ;;  %v197_v42 = vld [vmem:[%s2955_s1 + $0x3b8] sm:$0xff]  ;;  %v1487_v45 = vpack.c.bf16 %v195_v40, %v191_v39  ;;  %v194_v47 = vld [vmem:[%s2955_s1 + $0x3a0] sm:$0xff]  ;;  %v192_v48 = vld [vmem:[%s2955_s1 + $0x390] sm:$0xff] }
  0x29   :  { %v1615_v49 = vpack.c.bf16 %v197_v42, %v193_v41  ;;  %v196_v50 = vld [vmem:[%s2955_s1 + $0x3b0] sm:$0xff]  ;;  %v199_v51 = vld [vmem:[%s2955_s1 + $0x3c8] sm:$0xff]  ;;  %v201_v53 = vld [vmem:[%s2955_s1 + $0x3d8] sm:$0xff]  ;;  %v1489_v55 = vpack.c.bf16 %v194_v47, %v190_v46 }
  0x2a   :  { %1470 = vmatpush1.bf16.msra.mxu0 %v1469_v58  ;;  %v203_v52 = vld [vmem:[%s2955_s1 + $0x3e8] sm:$0xff]  ;;  %v205_v54 = vld [vmem:[%s2955_s1 + $0x3f8] sm:$0xff]  ;;  %v1617_v56 = vpack.c.bf16 %v196_v50, %v192_v48  ;;  %v198_v58 = vld [vmem:[%s2955_s1 + $0x3c0] sm:$0xff] }
  0x2b   :  { %1598 = vmatpush1.bf16.msra.mxu1 %v1597_v59  ;;  %1472 = vmatprep.subr.bf16.mxu0 %v1471_v60  ;;  %v1491_v57 = vpack.c.bf16 %v203_v52, %v199_v51  ;;  %v202_v59 = vld [vmem:[%s2955_s1 + $0x3e0] sm:$0xff]  ;;  %v200_v60 = vld [vmem:[%s2955_s1 + $0x3d0] sm:$0xff]  ;;  %v1619_v61 = vpack.c.bf16 %v205_v54, %v201_v53  ;;  %v207_v63 = vld [vmem:[%s2955_s1 + $0x408] sm:$0xff] }
  0x2c   :  { %1600 = vmatprep.subr.bf16.mxu1 %v1599_v0  ;;  %v204_v62 = vld [vmem:[%s2955_s1 + $0x3f0] sm:$0xff]  ;;  %v211_v0 = vld [vmem:[%s2955_s1 + $0x428] sm:$0xff]  ;;  %v209_v1 = vld [vmem:[%s2955_s1 + $0x418] sm:$0xff]  ;;  %v1493_v3 = vpack.c.bf16 %v202_v59, %v198_v58 }
  0x2d   :  { %v213_v2 = vld [vmem:[%s2955_s1 + $0x438] sm:$0xff]  ;;  %v1621_v4 = vpack.c.bf16 %v204_v62, %v200_v60  ;;  %v1495_v5 = vpack.c.bf16 %v211_v0, %v207_v63  ;;  %v210_v7 = vld [vmem:[%s2955_s1 + $0x420] sm:$0xff]  ;;  %v212_v10 = vld [vmem:[%s2955_s1 + $0x430] sm:$0xff] }
  0x2e   :  { %1474 = vmatpush1.bf16.msra.mxu0 %v1473_v6  ;;  %v206_v6 = vld [vmem:[%s2955_s1 + $0x400] sm:$0xff]  ;;  %v215_v11 = vld [vmem:[%s2955_s1 + $0x448] sm:$0xff]  ;;  %v217_v15 = vld [vmem:[%s2955_s1 + $0x458] sm:$0xff] }
  0x2f   :  { %1602 = vmatpush1.bf16.msra.mxu1 %v1601_v8  ;;  %1476 = vmatprep.subr.bf16.mxu0 %v1475_v9  ;;  %v1623_v8 = vpack.c.bf16 %v213_v2, %v209_v1  ;;  %v208_v9 = vld [vmem:[%s2955_s1 + $0x410] sm:$0xff]  ;;  %v219_v12 = vld [vmem:[%s2955_s1 + $0x468] sm:$0xff]  ;;  %v1497_v14 = vpack.c.bf16 %v210_v7, %v206_v6  ;;  %v221_v16 = vld [vmem:[%s2955_s1 + $0x478] sm:$0xff] }
  0x30   :  { %1604 = vmatprep.subr.bf16.mxu1 %v1603_v13  ;;  %v14_v13 = vld [vmem:[%s2956_s0] sm:$0xff]  ;;  %v1625_v17 = vpack.c.bf16 %v212_v10, %v208_v9  ;;  %v216_v22 = vld [vmem:[%s2955_s1 + $0x450] sm:$0xff]  ;;  %v1627_v24 = vpack.c.bf16 %v221_v16, %v217_v15  ;;  %v227_v26 = vld [vmem:[%s2955_s1 + $0x4a8] sm:$0xff] }
  0x31   :  { %v214_v18 = vld [vmem:[%s2955_s1 + $0x440] sm:$0xff]  ;;  %v220_v23 = vld [vmem:[%s2955_s1 + $0x470] sm:$0xff]  ;;  %v225_v29 = vld [vmem:[%s2955_s1 + $0x498] sm:$0xff] }
  0x32   :  { %1478 = vmatpush1.bf16.msra.mxu0 %v1477_v19  ;;  %v218_v19 = vld [vmem:[%s2955_s1 + $0x460] sm:$0xff]  ;;  %v229_v30 = vld [vmem:[%s2955_s1 + $0x4b8] sm:$0xff]  ;;  %v23_v34 = vld [vmem:[%s2956_s0 + $0x48] sm:$0xff] }
  0x33   :  { %1606 = vmatpush1.bf16.msra.mxu1 %v1605_v20  ;;  %1480 = vmatprep.subr.bf16.mxu0 %v1479_v21  ;;  %v19_v20 = vld [vmem:[%s2956_s0 + $0x28] sm:$0xff]  ;;  %v1499_v21 = vpack.c.bf16 %v219_v12, %v215_v11  ;;  %v18_v27 = vld [vmem:[%s2956_s0 + $0x20] sm:$0xff]  ;;  %v1501_v28 = vpack.c.bf16 %v218_v19, %v214_v18  ;;  %v224_v36 = vld [vmem:[%s2955_s1 + $0x490] sm:$0xff]  ;;  %v1631_v38 = vpack.c.bf16 %v229_v30, %v225_v29 }
  0x34   :  { %1608 = vmatprep.subr.bf16.mxu1 %v1607_v25  ;;  %v223_v25 = vld [vmem:[%s2955_s1 + $0x488] sm:$0xff]  ;;  %v22_v41 = vld [vmem:[%s2956_s0 + $0x40] sm:$0xff]  ;;  %v232_v50 = vld [vmem:[%s2955_s1 + $0x4d0] sm:$0xff] }
  0x35   :  { %v1503_v35 = vpack.c.bf16 %v227_v26, %v223_v25  ;;  %v231_v39 = vld [vmem:[%s2955_s1 + $0x4c8] sm:$0xff]  ;;  %v230_v46 = vld [vmem:[%s2955_s1 + $0x4c0] sm:$0xff]  ;;  %v236_v51 = vld [vmem:[%s2955_s1 + $0x4f0] sm:$0xff] }
  0x36   :  { %1482 = vmatpush1.bf16.msra.mxu0 %v1481_v31  ;;  %v1629_v31 = vpack.c.bf16 %v220_v23, %v216_v22  ;;  %v235_v40 = vld [vmem:[%s2955_s1 + $0x4e8] sm:$0xff]  ;;  %v234_v47 = vld [vmem:[%s2955_s1 + $0x4e0] sm:$0xff]  ;;  %v245_v58 = vld [vmem:[%s2955_s1 + $0x538] sm:$0xff]  ;;  %v1637_v59 = vpack.c.bf16 %v236_v51, %v232_v50 }
  0x37   :  { %1610 = vmatpush1.bf16.msra.mxu1 %v1609_v32  ;;  %1484 = vmatprep.subr.bf16.mxu0 %v1483_v33  ;;  %v222_v32 = vld [vmem:[%s2955_s1 + $0x480] sm:$0xff]  ;;  %v27_v48 = vld [vmem:[%s2956_s0 + $0x68] sm:$0xff]  ;;  %v240_v0 = vld [vmem:[%s2955_s1 + $0x510] sm:$0xff] }
  0x38   :  { %1612 = vmatprep.subr.bf16.mxu1 %v1611_v37  ;;  %v226_v33 = vld [vmem:[%s2955_s1 + $0x4a0] sm:$0xff]  ;;  %v228_v37 = vld [vmem:[%s2955_s1 + $0x4b0] sm:$0xff]  ;;  %v239_v53 = vld [vmem:[%s2955_s1 + $0x508] sm:$0xff] }
  0x39   :  { %v1505_v42 = vpack.c.bf16 %v226_v33, %v222_v32  ;;  %v243_v54 = vld [vmem:[%s2955_s1 + $0x528] sm:$0xff]  ;;  %v238_v60 = vld [vmem:[%s2955_s1 + $0x500] sm:$0xff]  ;;  %v244_v1 = vld [vmem:[%s2955_s1 + $0x530] sm:$0xff] }
  0x3a   :  { %1486 = vmatpush1.bf16.msra.mxu0 %v1485_v43  ;;  %v233_v43 = vld [vmem:[%s2955_s1 + $0x4d8] sm:$0xff]  ;;  %v31_v62 = vld [vmem:[%s2956_s0 + $0x88] sm:$0xff]  ;;  %v1511_v63 = vpack.c.bf16 %v243_v54, %v239_v53  ;;  %v1641_v9 = vpack.c.bf16 %v244_v1, %v240_v0  ;;  %v246_v10 = vld [vmem:[%s2955_s1 + $0x540] sm:$0xff] }
  0x3b   :  { %1614 = vmatpush1.bf16.msra.mxu1 %v1613_v44  ;;  %1488 = vmatprep.subr.bf16.mxu0 %v1487_v45  ;;  %v237_v44 = vld [vmem:[%s2955_s1 + $0x4f8] sm:$0xff]  ;;  %v1633_v45 = vpack.c.bf16 %v228_v37, %v224_v36  ;;  %v250_v11 = vld [vmem:[%s2955_s1 + $0x560] sm:$0xff]  ;;  %v35_v12 = vld [vmem:[%s2956_s0 + $0xa8] sm:$0xff] }
  0x3c   :  { %1616 = vmatprep.subr.bf16.mxu1 %v1615_v49  ;;  %v1507_v49 = vpack.c.bf16 %v235_v40, %v231_v39  ;;  %v1635_v52 = vpack.c.bf16 %v237_v44, %v233_v43  ;;  %v249_v7 = vld [vmem:[%s2955_s1 + $0x558] sm:$0xff]  ;;  %v252_v15 = vld [vmem:[%s2955_s1 + $0x570] sm:$0xff]  ;;  %v259_v18 = vld [vmem:[%s2955_s1 + $0x5a8] sm:$0xff] }
  0x3d   :  { %v34_v19 = vld [vmem:[%s2956_s0 + $0xa0] sm:$0xff]  ;;  %v261_v22 = vld [vmem:[%s2955_s1 + $0x5b8] sm:$0xff]  ;;  %v39_v26 = vld [vmem:[%s2956_s0 + $0xc8] sm:$0xff] }
  0x3e   :  { %1490 = vmatpush1.bf16.msra.mxu0 %v1489_v55  ;;  %v26_v55 = vld [vmem:[%s2956_s0 + $0x60] sm:$0xff]  ;;  %v260_v29 = vld [vmem:[%s2955_s1 + $0x5b0] sm:$0xff]  ;;  %v267_v32 = vld [vmem:[%s2955_s1 + $0x5e8] sm:$0xff] }
  0x3f   :  { %1618 = vmatpush1.bf16.msra.mxu1 %v1617_v56  ;;  %1492 = vmatprep.subr.bf16.mxu0 %v1491_v57  ;;  %v1509_v56 = vpack.c.bf16 %v234_v47, %v230_v46  ;;  %v241_v57 = vld [vmem:[%s2955_s1 + $0x518] sm:$0xff]  ;;  %v258_v25 = vld [vmem:[%s2955_s1 + $0x5a0] sm:$0xff]  ;;  %v43_v40 = vld [vmem:[%s2956_s0 + $0xe8] sm:$0xff] }
  0x40   :  { %1620 = vmatprep.subr.bf16.mxu1 %v1619_v61  ;;  %v242_v61 = vld [vmem:[%s2955_s1 + $0x520] sm:$0xff]  ;;  %v1639_v2 = vpack.c.bf16 %v245_v58, %v241_v57  ;;  %v269_v36 = vld [vmem:[%s2955_s1 + $0x5f8] sm:$0xff]  ;;  %v268_v43 = vld [vmem:[%s2955_s1 + $0x5f0] sm:$0xff] }
  0x41   :  { %v1513_v6 = vpack.c.bf16 %v242_v61, %v238_v60  ;;  %v38_v33 = vld [vmem:[%s2956_s0 + $0xc0] sm:$0xff]  ;;  %v275_v46 = vld [vmem:[%s2955_s1 + $0x628] sm:$0xff]  ;;  %v277_v50 = vld [vmem:[%s2955_s1 + $0x638] sm:$0xff] }
  0x42   :  { %1494 = vmatpush1.bf16.msra.mxu0 %v1493_v3  ;;  %v247_v3 = vld [vmem:[%s2955_s1 + $0x548] sm:$0xff]  ;;  %v266_v39 = vld [vmem:[%s2955_s1 + $0x5e0] sm:$0xff]  ;;  %v276_v57 = vld [vmem:[%s2955_s1 + $0x630] sm:$0xff] }
  0x43   :  { %1622 = vmatpush1.bf16.msra.mxu1 %v1621_v4  ;;  %1496 = vmatprep.subr.bf16.mxu0 %v1495_v5  ;;  %v251_v4 = vld [vmem:[%s2955_s1 + $0x568] sm:$0xff]  ;;  %v30_v5 = vld [vmem:[%s2956_s0 + $0x80] sm:$0xff]  ;;  %v285_v0 = vld [vmem:[%s2955_s1 + $0x678] sm:$0xff] }
  0x44   :  { %1624 = vmatprep.subr.bf16.mxu1 %v1623_v8  ;;  %v253_v8 = vld [vmem:[%s2955_s1 + $0x578] sm:$0xff]  ;;  %v42_v47 = vld [vmem:[%s2956_s0 + $0xe0] sm:$0xff]  ;;  %v47_v54 = vld [vmem:[%s2956_s0 + $0x108] sm:$0xff] }
  0x45   :  { %399 = vmatmul.mubr.f32.vlgmr.msra.gmra.mrb[0].mxu0 %v14_v13  ;;  %v1643_v16 = vpack.c.bf16 %v253_v8, %v249_v7  ;;  %v274_v53 = vld [vmem:[%s2955_s1 + $0x620] sm:$0xff]  ;;  %v283_v60 = vld [vmem:[%s2955_s1 + $0x668] sm:$0xff]  ;;  %v284_v7 = vld [vmem:[%s2955_s1 + $0x670] sm:$0xff] }
  0x46   :  { %721 = vmatmul.mubr.f32.vlgmr.msra.gmra.mrb[0].mxu1 %v14_v13  ;;  %1498 = vmatpush1.bf16.msra.mxu0 %v1497_v14  ;;  %v1515_v13 = vpack.c.bf16 %v251_v4, %v247_v3  ;;  %v248_v14 = vld [vmem:[%s2955_s1 + $0x550] sm:$0xff]  ;;  %v46_v61 = vld [vmem:[%s2956_s0 + $0x100] sm:$0xff]  ;;  %v51_v4 = vld [vmem:[%s2956_s0 + $0x128] sm:$0xff] }
  0x47   :  { %1626 = vmatpush1.bf16.msra.mxu1 %v1625_v17  ;;  %404 = vmatprep.mubr.f32.mxu0 %v19_v20  ;;  %v255_v17 = vld [vmem:[%s2955_s1 + $0x588] sm:$0xff]  ;;  %v1645_v23 = vpack.c.bf16 %v252_v15, %v248_v14  ;;  %v282_v3 = vld [vmem:[%s2955_s1 + $0x660] sm:$0xff]  ;;  %v293_v14 = vld [vmem:[%s2955_s1 + $0x6b8] sm:$0xff] }
  0x48   :  { %726 = vmatprep.mubr.f32.mxu1 %v19_v20  ;;  %1500 = vmatprep.subr.bf16.mxu0 %v1499_v21  ;;  %v1517_v20 = vpack.c.bf16 %v250_v11, %v246_v10  ;;  %v257_v21 = vld [vmem:[%s2955_s1 + $0x598] sm:$0xff]  ;;  %v291_v10 = vld [vmem:[%s2955_s1 + $0x6a8] sm:$0xff]  ;;  %v50_v11 = vld [vmem:[%s2956_s0 + $0x120] sm:$0xff] }
  0x49   :  { %405 = vmatmul.mubr.f32.gmra.mrb[2].mxu0 %v18_v27  ;;  %1628 = vmatprep.subr.bf16.mxu1 %v1627_v24  ;;  %v254_v24 = vld [vmem:[%s2955_s1 + $0x580] sm:$0xff]  ;;  %v1647_v30 = vpack.c.bf16 %v261_v22, %v257_v21  ;;  %v292_v21 = vld [vmem:[%s2955_s1 + $0x6b0] sm:$0xff] }
  0x4a   :  { %727 = vmatmul.mubr.f32.gmra.mrb[2].mxu1 %v18_v27  ;;  %1502 = vmatpush1.bf16.msra.mxu0 %v1501_v28  ;;  %v1519_v27 = vpack.c.bf16 %v259_v18, %v255_v17  ;;  %v256_v28 = vld [vmem:[%s2955_s1 + $0x590] sm:$0xff]  ;;  %v290_v17 = vld [vmem:[%s2955_s1 + $0x6a0] sm:$0xff]  ;;  %v55_v18 = vld [vmem:[%s2956_s0 + $0x148] sm:$0xff] }
  0x4b   :  { %1630 = vmatpush1.bf16.msra.mxu1 %v1629_v31  ;;  %410 = vmatprep.mubr.f32.mxu0 %v23_v34  ;;  %v263_v31 = vld [vmem:[%s2955_s1 + $0x5c8] sm:$0xff]  ;;  %v1649_v37 = vpack.c.bf16 %v260_v29, %v256_v28  ;;  %v301_v28 = vld [vmem:[%s2955_s1 + $0x6f8] sm:$0xff] }
  0x4c   :  { %732 = vmatprep.mubr.f32.mxu1 %v23_v34  ;;  %1504 = vmatprep.subr.bf16.mxu0 %v1503_v35  ;;  %v1521_v34 = vpack.c.bf16 %v258_v25, %v254_v24  ;;  %v265_v35 = vld [vmem:[%s2955_s1 + $0x5d8] sm:$0xff]  ;;  %v299_v24 = vld [vmem:[%s2955_s1 + $0x6e8] sm:$0xff]  ;;  %v54_v25 = vld [vmem:[%s2956_s0 + $0x140] sm:$0xff] }
  0x4d   :  { %411 = vmatmul.mubr.f32.gmra.mrb[4].mxu0 %v22_v41  ;;  %1632 = vmatprep.subr.bf16.mxu1 %v1631_v38  ;;  %v262_v38 = vld [vmem:[%s2955_s1 + $0x5c0] sm:$0xff]  ;;  %v1651_v44 = vpack.c.bf16 %v269_v36, %v265_v35  ;;  %v300_v35 = vld [vmem:[%s2955_s1 + $0x6f0] sm:$0xff] }
  0x4e   :  { %733 = vmatmul.mubr.f32.gmra.mrb[4].mxu1 %v22_v41  ;;  %1506 = vmatpush1.bf16.msra.mxu0 %v1505_v42  ;;  %v1523_v41 = vpack.c.bf16 %v267_v32, %v263_v31  ;;  %v264_v42 = vld [vmem:[%s2955_s1 + $0x5d0] sm:$0xff]  ;;  %v298_v31 = vld [vmem:[%s2955_s1 + $0x6e0] sm:$0xff]  ;;  %v59_v32 = vld [vmem:[%s2956_s0 + $0x168] sm:$0xff] }
  0x4f   :  { %1634 = vmatpush1.bf16.msra.mxu1 %v1633_v45  ;;  %416 = vmatprep.mubr.f32.mxu0 %v27_v48  ;;  %v271_v45 = vld [vmem:[%s2955_s1 + $0x608] sm:$0xff]  ;;  %v1653_v51 = vpack.c.bf16 %v268_v43, %v264_v42  ;;  %v309_v42 = vld [vmem:[%s2955_s1 + $0x738] sm:$0xff] }
  0x50   :  { %738 = vmatprep.mubr.f32.mxu1 %v27_v48  ;;  %1508 = vmatprep.subr.bf16.mxu0 %v1507_v49  ;;  %v1525_v48 = vpack.c.bf16 %v266_v39, %v262_v38  ;;  %v273_v49 = vld [vmem:[%s2955_s1 + $0x618] sm:$0xff]  ;;  %v307_v38 = vld [vmem:[%s2955_s1 + $0x728] sm:$0xff]  ;;  %v58_v39 = vld [vmem:[%s2956_s0 + $0x160] sm:$0xff] }
  0x51   :  { %417 = vmatmul.mubr.f32.gmra.mrb[6].mxu0 %v26_v55  ;;  %1636 = vmatprep.subr.bf16.mxu1 %v1635_v52  ;;  %v270_v52 = vld [vmem:[%s2955_s1 + $0x600] sm:$0xff]  ;;  %v1655_v58 = vpack.c.bf16 %v277_v50, %v273_v49  ;;  %v308_v49 = vld [vmem:[%s2955_s1 + $0x730] sm:$0xff] }
  0x52   :  { %739 = vmatmul.mubr.f32.gmra.mrb[6].mxu1 %v26_v55  ;;  %1510 = vmatpush1.bf16.msra.mxu0 %v1509_v56  ;;  %v1527_v55 = vpack.c.bf16 %v275_v46, %v271_v45  ;;  %v272_v56 = vld [vmem:[%s2955_s1 + $0x610] sm:$0xff]  ;;  %v306_v45 = vld [vmem:[%s2955_s1 + $0x720] sm:$0xff]  ;;  %v63_v46 = vld [vmem:[%s2956_s0 + $0x188] sm:$0xff] }
  0x53   :  { %1638 = vmatpush1.bf16.msra.mxu1 %v1637_v59  ;;  %422 = vmatprep.mubr.f32.mxu0 %v31_v62  ;;  %v279_v59 = vld [vmem:[%s2955_s1 + $0x648] sm:$0xff]  ;;  %v1657_v1 = vpack.c.bf16 %v276_v57, %v272_v56  ;;  %v317_v56 = vld [vmem:[%s2955_s1 + $0x778] sm:$0xff] }
  0x54   :  { %744 = vmatprep.mubr.f32.mxu1 %v31_v62  ;;  %1512 = vmatprep.subr.bf16.mxu0 %v1511_v63  ;;  %v1529_v62 = vpack.c.bf16 %v274_v53, %v270_v52  ;;  %v281_v63 = vld [vmem:[%s2955_s1 + $0x658] sm:$0xff]  ;;  %v315_v52 = vld [vmem:[%s2955_s1 + $0x768] sm:$0xff]  ;;  %v62_v53 = vld [vmem:[%s2956_s0 + $0x180] sm:$0xff] }
  0x55   :  { %423 = vmatmul.mubr.f32.gmra.mrb[8].mxu0 %v30_v5  ;;  %1640 = vmatprep.subr.bf16.mxu1 %v1639_v2  ;;  %v278_v2 = vld [vmem:[%s2955_s1 + $0x640] sm:$0xff]  ;;  %v1659_v8 = vpack.c.bf16 %v285_v0, %v281_v63  ;;  %v316_v63 = vld [vmem:[%s2955_s1 + $0x770] sm:$0xff] }
  0x56   :  { %745 = vmatmul.mubr.f32.gmra.mrb[8].mxu1 %v30_v5  ;;  %1514 = vmatpush1.bf16.msra.mxu0 %v1513_v6  ;;  %v1531_v5 = vpack.c.bf16 %v283_v60, %v279_v59  ;;  %v280_v6 = vld [vmem:[%s2955_s1 + $0x650] sm:$0xff]  ;;  %v314_v59 = vld [vmem:[%s2955_s1 + $0x760] sm:$0xff]  ;;  %v67_v60 = vld [vmem:[%s2956_s0 + $0x1a8] sm:$0xff] }
  0x57   :  { %1642 = vmatpush1.bf16.msra.mxu1 %v1641_v9  ;;  %428 = vmatprep.mubr.f32.mxu0 %v35_v12  ;;  %v287_v9 = vld [vmem:[%s2955_s1 + $0x688] sm:$0xff]  ;;  %v1661_v15 = vpack.c.bf16 %v284_v7, %v280_v6  ;;  %v325_v6 = vld [vmem:[%s2955_s1 + $0x7b8] sm:$0xff] }
  0x58   :  { %750 = vmatprep.mubr.f32.mxu1 %v35_v12  ;;  %1516 = vmatprep.subr.bf16.mxu0 %v1515_v13  ;;  %v1533_v12 = vpack.c.bf16 %v282_v3, %v278_v2  ;;  %v289_v13 = vld [vmem:[%s2955_s1 + $0x698] sm:$0xff]  ;;  %v323_v2 = vld [vmem:[%s2955_s1 + $0x7a8] sm:$0xff]  ;;  %v66_v3 = vld [vmem:[%s2956_s0 + $0x1a0] sm:$0xff] }
  0x59   :  { %429 = vmatmul.mubr.f32.gmra.mrb[10].mxu0 %v34_v19  ;;  %1644 = vmatprep.subr.bf16.mxu1 %v1643_v16  ;;  %v286_v16 = vld [vmem:[%s2955_s1 + $0x680] sm:$0xff]  ;;  %v1663_v22 = vpack.c.bf16 %v293_v14, %v289_v13  ;;  %v324_v13 = vld [vmem:[%s2955_s1 + $0x7b0] sm:$0xff] }
  0x5a   :  { %751 = vmatmul.mubr.f32.gmra.mrb[10].mxu1 %v34_v19  ;;  %1518 = vmatpush1.bf16.msra.mxu0 %v1517_v20  ;;  %v1535_v19 = vpack.c.bf16 %v291_v10, %v287_v9  ;;  %v288_v20 = vld [vmem:[%s2955_s1 + $0x690] sm:$0xff]  ;;  %v322_v9 = vld [vmem:[%s2955_s1 + $0x7a0] sm:$0xff]  ;;  %v71_v10 = vld [vmem:[%s2956_s0 + $0x1c8] sm:$0xff] }
  0x5b   :  { %1646 = vmatpush1.bf16.msra.mxu1 %v1645_v23  ;;  %434 = vmatprep.mubr.f32.mxu0 %v39_v26  ;;  %v295_v23 = vld [vmem:[%s2955_s1 + $0x6c8] sm:$0xff]  ;;  %v1665_v29 = vpack.c.bf16 %v292_v21, %v288_v20  ;;  %v333_v20 = vld [vmem:[%s2955_s1 + $0x7f8] sm:$0xff] }
  0x5c   :  { %756 = vmatprep.mubr.f32.mxu1 %v39_v26  ;;  %1520 = vmatprep.subr.bf16.mxu0 %v1519_v27  ;;  %v1537_v26 = vpack.c.bf16 %v290_v17, %v286_v16  ;;  %v297_v27 = vld [vmem:[%s2955_s1 + $0x6d8] sm:$0xff]  ;;  %v331_v16 = vld [vmem:[%s2955_s1 + $0x7e8] sm:$0xff]  ;;  %v70_v17 = vld [vmem:[%s2956_s0 + $0x1c0] sm:$0xff] }
  0x5d   :  { %435 = vmatmul.mubr.f32.gmra.mrb[12].mxu0 %v38_v33  ;;  %1648 = vmatprep.subr.bf16.mxu1 %v1647_v30  ;;  %v294_v30 = vld [vmem:[%s2955_s1 + $0x6c0] sm:$0xff]  ;;  %v1667_v36 = vpack.c.bf16 %v301_v28, %v297_v27  ;;  %v332_v27 = vld [vmem:[%s2955_s1 + $0x7f0] sm:$0xff] }
  0x5e   :  { %757 = vmatmul.mubr.f32.gmra.mrb[12].mxu1 %v38_v33  ;;  %1522 = vmatpush1.bf16.msra.mxu0 %v1521_v34  ;;  %v1539_v33 = vpack.c.bf16 %v299_v24, %v295_v23  ;;  %v296_v34 = vld [vmem:[%s2955_s1 + $0x6d0] sm:$0xff]  ;;  %v330_v23 = vld [vmem:[%s2955_s1 + $0x7e0] sm:$0xff]  ;;  %v75_v24 = vld [vmem:[%s2956_s0 + $0x1e8] sm:$0xff] }
  0x5f   :  { %1650 = vmatpush1.bf16.msra.mxu1 %v1649_v37  ;;  %440 = vmatprep.mubr.f32.mxu0 %v43_v40  ;;  %v303_v37 = vld [vmem:[%s2955_s1 + $0x708] sm:$0xff]  ;;  %v1669_v43 = vpack.c.bf16 %v300_v35, %v296_v34  ;;  %v17_v34 = vld [vmem:[%s2956_s0 + $0x18] sm:$0xff] }
  0x60   :  { %762 = vmatprep.mubr.f32.mxu1 %v43_v40  ;;  %1524 = vmatprep.subr.bf16.mxu0 %v1523_v41  ;;  %v1541_v40 = vpack.c.bf16 %v298_v31, %v294_v30  ;;  %v305_v41 = vld [vmem:[%s2955_s1 + $0x718] sm:$0xff]  ;;  %v1091_v30 = vld [vmem:[%s2957_s2 + $0x88] sm:$0xff]  ;;  %v74_v31 = vld [vmem:[%s2956_s0 + $0x1e0] sm:$0xff] }
  0x61   :  { %441 = vmatmul.mubr.f32.gmra.mrb[14].mxu0 %v42_v47  ;;  %1652 = vmatprep.subr.bf16.mxu1 %v1651_v44  ;;  %v302_v44 = vld [vmem:[%s2955_s1 + $0x700] sm:$0xff]  ;;  %v1671_v50 = vpack.c.bf16 %v309_v42, %v305_v41  ;;  %v21_v41 = vld [vmem:[%s2956_s0 + $0x38] sm:$0xff] }
  0x62   :  { %763 = vmatmul.mubr.f32.gmra.mrb[14].mxu1 %v42_v47  ;;  %1526 = vmatpush1.bf16.msra.mxu0 %v1525_v48  ;;  %v1543_v47 = vpack.c.bf16 %v307_v38, %v303_v37  ;;  %v304_v48 = vld [vmem:[%s2955_s1 + $0x710] sm:$0xff]  ;;  %v1075_v37 = vld [vmem:[%s2957_s2 + $0x8] sm:$0xff] }
  0x63   :  { %1654 = vmatpush1.bf16.msra.mxu1 %v1653_v51  ;;  %446 = vmatprep.mubr.f32.mxu0 %v47_v54  ;;  %v311_v51 = vld [vmem:[%s2955_s1 + $0x748] sm:$0xff]  ;;  %v1673_v57 = vpack.c.bf16 %v308_v49, %v304_v48  ;;  %v1092_v38 = vld [vmem:[%s2957_s2 + $0x90] sm:$0xff]  ;;  %v25_v49 = vld [vmem:[%s2956_s0 + $0x58] sm:$0xff] }
  0x64   :  { %768 = vmatprep.mubr.f32.mxu1 %v47_v54  ;;  %1528 = vmatprep.subr.bf16.mxu0 %v1527_v55  ;;  %v1545_v54 = vpack.c.bf16 %v306_v45, %v302_v44  ;;  %v313_v55 = vld [vmem:[%s2955_s1 + $0x758] sm:$0xff]  ;;  %v1076_v44 = vld [vmem:[%s2957_s2 + $0x10] sm:$0xff] }
  0x65   :  { %447 = vmatmul.mubr.f32.gmra.mrb[16].mxu0 %v46_v61  ;;  %1656 = vmatprep.subr.bf16.mxu1 %v1655_v58  ;;  %v310_v58 = vld [vmem:[%s2955_s1 + $0x740] sm:$0xff]  ;;  %v1675_v0 = vpack.c.bf16 %v317_v56, %v313_v55  ;;  %v1077_v45 = vld [vmem:[%s2957_s2 + $0x18] sm:$0xff]  ;;  %v20_v48 = vld [vmem:[%s2956_s0 + $0x30] sm:$0xff] }
  0x66   :  { %769 = vmatmul.mubr.f32.gmra.mrb[16].mxu1 %v46_v61  ;;  %1530 = vmatpush1.bf16.msra.mxu0 %v1529_v62  ;;  %v1547_v61 = vpack.c.bf16 %v315_v52, %v311_v51  ;;  %v312_v62 = vld [vmem:[%s2955_s1 + $0x750] sm:$0xff]  ;;  %v1078_v52 = vld [vmem:[%s2957_s2 + $0x20] sm:$0xff]  ;;  %v1097_v55 = vld [vmem:[%s2957_s2 + $0xb8] sm:$0xff] }
  0x67   :  { %1658 = vmatpush1.bf16.msra.mxu1 %v1657_v1  ;;  %452 = vmatprep.mubr.f32.mxu0 %v51_v4  ;;  %v319_v1 = vld [vmem:[%s2955_s1 + $0x788] sm:$0xff]  ;;  %v1677_v7 = vpack.c.bf16 %v316_v63, %v312_v62  ;;  %v24_v56 = vld [vmem:[%s2956_s0 + $0x50] sm:$0xff]  ;;  %v1098_v62 = vld [vmem:[%s2957_s2 + $0xc0] sm:$0xff] }
  0x68   :  { %774 = vmatprep.mubr.f32.mxu1 %v51_v4  ;;  %1532 = vmatprep.subr.bf16.mxu0 %v1531_v5  ;;  %v1549_v4 = vpack.c.bf16 %v314_v59, %v310_v58  ;;  %v321_v5 = vld [vmem:[%s2955_s1 + $0x798] sm:$0xff]  ;;  %v1099_v63 = vld [vmem:[%s2957_s2 + $0xc8] sm:$0xff] }
  0x69   :  { %453 = vmatmul.mubr.f32.gmra.mrb[18].mxu0 %v50_v11  ;;  %1660 = vmatprep.subr.bf16.mxu1 %v1659_v8  ;;  %v318_v8 = vld [vmem:[%s2955_s1 + $0x780] sm:$0xff]  ;;  %v1679_v14 = vpack.c.bf16 %v325_v6, %v321_v5  ;;  %v1083_v5 = vld [vmem:[%s2957_s2 + $0x48] sm:$0xff]  ;;  %v1100_v6 = vld [vmem:[%s2957_s2 + $0xd0] sm:$0xff] }
  0x6a   :  { %775 = vmatmul.mubr.f32.gmra.mrb[18].mxu1 %v50_v11  ;;  %1534 = vmatpush1.bf16.msra.mxu0 %v1533_v12  ;;  %v1551_v11 = vpack.c.bf16 %v323_v2, %v319_v1  ;;  %v320_v12 = vld [vmem:[%s2955_s1 + $0x790] sm:$0xff]  ;;  %v33_v1 = vld [vmem:[%s2956_s0 + $0x98] sm:$0xff] }
  0x6b   :  { %1662 = vmatpush1.bf16.msra.mxu1 %v1661_v15  ;;  %458 = vmatprep.mubr.f32.mxu0 %v55_v18  ;;  %v327_v15 = vld [vmem:[%s2955_s1 + $0x7c8] sm:$0xff]  ;;  %v1681_v21 = vpack.c.bf16 %v324_v13, %v320_v12  ;;  %v1084_v12 = vld [vmem:[%s2957_s2 + $0x50] sm:$0xff]  ;;  %v1085_v13 = vld [vmem:[%s2957_s2 + $0x58] sm:$0xff] }
  0x6c   :  { %780 = vmatprep.mubr.f32.mxu1 %v55_v18  ;;  %1536 = vmatprep.subr.bf16.mxu0 %v1535_v19  ;;  %v1553_v18 = vpack.c.bf16 %v322_v9, %v318_v8  ;;  %v329_v19 = vld [vmem:[%s2955_s1 + $0x7d8] sm:$0xff]  ;;  %v32_v8 = vld [vmem:[%s2956_s0 + $0x90] sm:$0xff] }
  0x6d   :  { %459 = vmatmul.mubr.f32.gmra.mrb[20].mxu0 %v54_v25  ;;  %1664 = vmatprep.subr.bf16.mxu1 %v1663_v22  ;;  %v326_v22 = vld [vmem:[%s2955_s1 + $0x7c0] sm:$0xff]  ;;  %v1683_v28 = vpack.c.bf16 %v333_v20, %v329_v19  ;;  %v37_v9 = vld [vmem:[%s2956_s0 + $0xb8] sm:$0xff]  ;;  %v40_v20 = vld [vmem:[%s2956_s0 + $0xd0] sm:$0xff] }
  0x6e   :  { %781 = vmatmul.mubr.f32.gmra.mrb[20].mxu1 %v54_v25  ;;  %1538 = vmatpush1.bf16.msra.mxu0 %v1537_v26  ;;  %v1555_v25 = vpack.c.bf16 %v331_v16, %v327_v15  ;;  %v328_v26 = vld [vmem:[%s2955_s1 + $0x7d0] sm:$0xff]  ;;  %v1103_v15 = vld [vmem:[%s2957_s2 + $0xe8] sm:$0xff] }
  0x6f   :  { %1666 = vmatpush1.bf16.msra.mxu1 %v1665_v29  ;;  %464 = vmatprep.mubr.f32.mxu0 %v59_v32  ;;  %v1090_v29 = vld [vmem:[%s2957_s2 + $0x80] sm:$0xff]  ;;  %v36_v16 = vld [vmem:[%s2956_s0 + $0xb0] sm:$0xff] }
  0x70   :  { %786 = vmatprep.mubr.f32.mxu1 %v59_v32  ;;  %1540 = vmatprep.subr.bf16.mxu0 %v1539_v33  ;;  %v1557_v32 = vpack.c.bf16 %v330_v23, %v326_v22  ;;  %v1685_v33 = vpack.c.bf16 %v332_v27, %v328_v26  ;;  %v1687_v35 = vpack.c.bf16 %v1091_v30, %v1090_v29  ;;  %v44_v22 = vld [vmem:[%s2956_s0 + $0xf0] sm:$0xff]  ;;  %v49_v23 = vld [vmem:[%s2956_s0 + $0x118] sm:$0xff] }
  0x71   :  { %465 = vmatmul.mubr.f32.gmra.mrb[22].mxu0 %v58_v39  ;;  %1668 = vmatprep.subr.bf16.mxu1 %v1667_v36  ;;  %v1074_v36 = vld [vmem:[%s2957_s2] sm:$0xff]  ;;  %v52_v26 = vld [vmem:[%s2956_s0 + $0x130] sm:$0xff]  ;;  %v57_v27 = vld [vmem:[%s2956_s0 + $0x158] sm:$0xff] }
  0x72   :  { %787 = vmatmul.mubr.f32.gmra.mrb[22].mxu1 %v58_v39  ;;  %1542 = vmatpush1.bf16.msra.mxu0 %v1541_v40  ;;  %v1093_v39 = vld [vmem:[%s2957_s2 + $0x98] sm:$0xff]  ;;  %v16_v40 = vld [vmem:[%s2956_s0 + $0x10] sm:$0xff]  ;;  %v1689_v42 = vpack.c.bf16 %v1075_v37, %v1074_v36 }
  0x73   :  { %1670 = vmatpush1.bf16.msra.mxu1 %v1669_v43  ;;  %470 = vmatprep.mubr.f32.mxu0 %v63_v46  ;;  %v1691_v43 = vpack.c.bf16 %v1093_v39, %v1092_v38  ;;  %v61_v29 = vld [vmem:[%s2956_s0 + $0x178] sm:$0xff]  ;;  %v60_v30 = vld [vmem:[%s2956_s0 + $0x170] sm:$0xff]  ;;  %v1086_v39 = vld [vmem:[%s2957_s2 + $0x60] sm:$0xff] }
  0x74   :  { %792 = vmatprep.mubr.f32.mxu1 %v63_v46  ;;  %1544 = vmatprep.subr.bf16.mxu0 %v1543_v47  ;;  %v1094_v46 = vld [vmem:[%s2957_s2 + $0xa0] sm:$0xff]  ;;  %v1095_v47 = vld [vmem:[%s2957_s2 + $0xa8] sm:$0xff]  ;;  %v72_v36 = vld [vmem:[%s2956_s0 + $0x1d0] sm:$0xff] }
  0x75   :  { %471 = vmatmul.mubr.f32.gmra.mrb[24].mxu0 %v62_v53  ;;  %1672 = vmatprep.subr.bf16.mxu1 %v1671_v50  ;;  %v1693_v50 = vpack.c.bf16 %v1077_v45, %v1076_v44  ;;  %v1695_v51 = vpack.c.bf16 %v1095_v47, %v1094_v46  ;;  %v77_v37 = vld [vmem:[%s2956_s0 + $0x1f8] sm:$0xff]  ;;  %v76_v38 = vld [vmem:[%s2956_s0 + $0x1f0] sm:$0xff] }
  0x76   :  { %793 = vmatmul.mubr.f32.gmra.mrb[24].mxu1 %v62_v53  ;;  %1546 = vmatpush1.bf16.msra.mxu0 %v1545_v54  ;;  %v1079_v53 = vld [vmem:[%s2957_s2 + $0x28] sm:$0xff]  ;;  %v1096_v54 = vld [vmem:[%s2957_s2 + $0xb0] sm:$0xff]  ;;  %v1089_v46 = vld [vmem:[%s2957_s2 + $0x78] sm:$0xff] }
  0x77   :  { %1674 = vmatpush1.bf16.msra.mxu1 %v1673_v57  ;;  %476 = vmatprep.mubr.f32.mxu0 %v67_v60  ;;  %v29_v57 = vld [vmem:[%s2956_s0 + $0x78] sm:$0xff]  ;;  %v1697_v58 = vpack.c.bf16 %v1079_v53, %v1078_v52  ;;  %v1699_v59 = vpack.c.bf16 %v1097_v55, %v1096_v54  ;;  %v1088_v45 = vld [vmem:[%s2957_s2 + $0x70] sm:$0xff] }
  0x78   :  { %798 = vmatprep.mubr.f32.mxu1 %v67_v60  ;;  %1548 = vmatprep.subr.bf16.mxu0 %v1547_v61  ;;  %v1080_v60 = vld [vmem:[%s2957_s2 + $0x30] sm:$0xff]  ;;  %v1081_v61 = vld [vmem:[%s2957_s2 + $0x38] sm:$0xff]  ;;  %v1717_v47 = vpack.c.bf16 %v1089_v46, %v1088_v45 }
  0x79   :  { %477 = vmatmul.mubr.f32.gmra.mrb[26].mxu0 %v66_v3  ;;  %1676 = vmatprep.subr.bf16.mxu1 %v1675_v0  ;;  %v28_v0 = vld [vmem:[%s2956_s0 + $0x70] sm:$0xff]  ;;  %v1701_v2 = vpack.c.bf16 %v1081_v61, %v1080_v60 }
  0x7a   :  { %799 = vmatmul.mubr.f32.gmra.mrb[26].mxu1 %v66_v3  ;;  %1550 = vmatpush1.bf16.msra.mxu0 %v1549_v4  ;;  %v1703_v3 = vpack.c.bf16 %v1099_v63, %v1098_v62  ;;  %v1082_v4 = vld [vmem:[%s2957_s2 + $0x40] sm:$0xff] }
  0x7b   :  { %1678 = vmatpush1.bf16.msra.mxu1 %v1677_v7  ;;  %482 = vmatprep.mubr.f32.mxu0 %v71_v10  ;;  %v1101_v7 = vld [vmem:[%s2957_s2 + $0xd8] sm:$0xff] }
  0x7c   :  { %804 = vmatprep.mubr.f32.mxu1 %v71_v10  ;;  %1552 = vmatprep.subr.bf16.mxu0 %v1551_v11  ;;  %v1705_v10 = vpack.c.bf16 %v1083_v5, %v1082_v4  ;;  %v1707_v11 = vpack.c.bf16 %v1101_v7, %v1100_v6 }
  0x7d   :  { %483 = vmatmul.mubr.f32.gmra.mrb[28].mxu0 %v70_v17  ;;  %1680 = vmatprep.subr.bf16.mxu1 %v1679_v14  ;;  %v1102_v14 = vld [vmem:[%s2957_s2 + $0xe0] sm:$0xff] }
  0x7e   :  { %805 = vmatmul.mubr.f32.gmra.mrb[28].mxu1 %v70_v17  ;;  %1554 = vmatpush1.bf16.msra.mxu0 %v1553_v18  ;;  %v41_v17 = vld [vmem:[%s2956_s0 + $0xd8] sm:$0xff]  ;;  %v1709_v18 = vpack.c.bf16 %v1085_v13, %v1084_v12  ;;  %v1711_v19 = vpack.c.bf16 %v1103_v15, %v1102_v14 }
  0x7f   :  { %1682 = vmatpush1.bf16.msra.mxu1 %v1681_v21  ;;  %488 = vmatprep.mubr.f32.mxu0 %v75_v24  ;;  %v45_v21 = vld [vmem:[%s2956_s0 + $0xf8] sm:$0xff] }
  0x80   :  { %810 = vmatprep.mubr.f32.mxu1 %v75_v24  ;;  %1556 = vmatprep.subr.bf16.mxu0 %v1555_v25  ;;  %v48_v24 = vld [vmem:[%s2956_s0 + $0x110] sm:$0xff]  ;;  %v53_v25 = vld [vmem:[%s2956_s0 + $0x138] sm:$0xff] }
  0x81   :  { %489 = vmatmul.mubr.f32.gmra.mrb[30].mxu0 %v74_v31  ;;  %1684 = vmatprep.subr.bf16.mxu1 %v1683_v28  ;;  %v56_v28 = vld [vmem:[%s2956_s0 + $0x150] sm:$0xff] }
  0x82   :  { %811 = vmatmul.mubr.f32.gmra.mrb[30].mxu1 %v74_v31  ;;  %1558 = vmatpush1.bf16.msra.mxu0 %v1557_v32  ;;  %v65_v31 = vld [vmem:[%s2956_s0 + $0x198] sm:$0xff]  ;;  %v64_v32 = vld [vmem:[%s2956_s0 + $0x190] sm:$0xff] }
  0x83   :  { %1686 = vmatpush1.bf16.msra.mxu1 %v1685_v33  ;;  %559 = vmatprep.mubr.f32.mxu0 %v17_v34  ;;  %v69_v33 = vld [vmem:[%s2956_s0 + $0x1b8] sm:$0xff] }
  0x84   :  { %881 = vmatprep.mubr.f32.mxu1 %v17_v34  ;;  %1688 = vmatprep.subr.bf16.mxu0 %v1687_v35  ;;  %v68_v34 = vld [vmem:[%s2956_s0 + $0x1b0] sm:$0xff] }
  0x85   :  { %560 = vmatmul.mubr.f32.vlgmr.msra.gmra.mrb[0].mxu0 %v16_v40  ;;  %1719 = vmatprep.subr.bf16.mxu1 %v1687_v35  ;;  %v73_v35 = vld [vmem:[%s2956_s0 + $0x1d8] sm:$0xff] }
  0x86   :  { %882 = vmatmul.mubr.f32.vlgmr.msra.gmra.mrb[0].mxu1 %v16_v40  ;;  %565 = vmatprep.mubr.f32.mxu0 %v21_v41  ;;  %v1087_v40 = vld [vmem:[%s2957_s2 + $0x68] sm:$0xff] }
  0x87   :  { %887 = vmatprep.mubr.f32.mxu1 %v21_v41  ;;  %1690 = vmatpush3.bf16.msra.mxu0 %v1689_v42  ;;  %v1713_v41 = vpack.c.bf16 %v1087_v40, %v1086_v39 }
  0x88   :  { %1727 = vmatpush3.bf16.msra.mxu1 %v1689_v42  ;;  %1692 = vmatprep.subr.bf16.mxu0 %v1691_v43  ;;  %v1104_v42 = vld [vmem:[%s2957_s2 + $0xf0] sm:$0xff] }
  0x89   :  { %566 = vmatmul.mubr.f32.gmra.mrb[2].mxu0 %v20_v48  ;;  %1720 = vmatprep.subr.bf16.mxu1 %v1691_v43  ;;  %v1105_v43 = vld [vmem:[%s2957_s2 + $0xf8] sm:$0xff] }
  0x8a   :  { %888 = vmatmul.mubr.f32.gmra.mrb[2].mxu1 %v20_v48  ;;  %571 = vmatprep.mubr.f32.mxu0 %v25_v49  ;;  %v1715_v44 = vpack.c.bf16 %v1105_v43, %v1104_v42 }
  0x8b   :  { %893 = vmatprep.mubr.f32.mxu1 %v25_v49  ;;  %1694 = vmatpush3.bf16.msra.mxu0 %v1693_v50 }
  0x8c   :  { %1696 = vmatprep.subr.bf16.mxu0 %v1695_v51  ;;  %1728 = vmatpush3.bf16.msra.mxu1 %v1693_v50 }
  0x8d   :  { %572 = vmatmul.mubr.f32.gmra.mrb[4].mxu0 %v24_v56  ;;  %1721 = vmatprep.subr.bf16.mxu1 %v1695_v51 }
  0x8e   :  { %894 = vmatmul.mubr.f32.gmra.mrb[4].mxu1 %v24_v56  ;;  %577 = vmatprep.mubr.f32.mxu0 %v29_v57 }
  0x8f   :  { %899 = vmatprep.mubr.f32.mxu1 %v29_v57  ;;  %1698 = vmatpush3.bf16.msra.mxu0 %v1697_v58 }
  0x90   :  { %1700 = vmatprep.subr.bf16.mxu0 %v1699_v59  ;;  %1729 = vmatpush3.bf16.msra.mxu1 %v1697_v58 }
  0x91   :  { %578 = vmatmul.mubr.f32.gmra.mrb[6].mxu0 %v28_v0  ;;  %1722 = vmatprep.subr.bf16.mxu1 %v1699_v59 }
  0x92   :  { %900 = vmatmul.mubr.f32.gmra.mrb[6].mxu1 %v28_v0  ;;  %583 = vmatprep.mubr.f32.mxu0 %v33_v1 }
  0x93   :  { %905 = vmatprep.mubr.f32.mxu1 %v33_v1  ;;  %1702 = vmatpush3.bf16.msra.mxu0 %v1701_v2 }
  0x94   :  { %1704 = vmatprep.subr.bf16.mxu0 %v1703_v3  ;;  %1730 = vmatpush3.bf16.msra.mxu1 %v1701_v2 }
  0x95   :  { %584 = vmatmul.mubr.f32.gmra.mrb[8].mxu0 %v32_v8  ;;  %1723 = vmatprep.subr.bf16.mxu1 %v1703_v3 }
  0x96   :  { %906 = vmatmul.mubr.f32.gmra.mrb[8].mxu1 %v32_v8  ;;  %589 = vmatprep.mubr.f32.mxu0 %v37_v9 }
  0x97   :  { %911 = vmatprep.mubr.f32.mxu1 %v37_v9  ;;  %1706 = vmatpush3.bf16.msra.mxu0 %v1705_v10 }
  0x98   :  { %1708 = vmatprep.subr.bf16.mxu0 %v1707_v11  ;;  %1731 = vmatpush3.bf16.msra.mxu1 %v1705_v10 }
  0x99   :  { %590 = vmatmul.mubr.f32.gmra.mrb[10].mxu0 %v36_v16  ;;  %1724 = vmatprep.subr.bf16.mxu1 %v1707_v11 }
  0x9a   :  { %912 = vmatmul.mubr.f32.gmra.mrb[10].mxu1 %v36_v16  ;;  %595 = vmatprep.mubr.f32.mxu0 %v41_v17 }
  0x9b   :  { %917 = vmatprep.mubr.f32.mxu1 %v41_v17  ;;  %1710 = vmatpush3.bf16.msra.mxu0 %v1709_v18 }
  0x9c   :  { %1712 = vmatprep.subr.bf16.mxu0 %v1711_v19  ;;  %1732 = vmatpush3.bf16.msra.mxu1 %v1709_v18 }
  0x9d   :  { %596 = vmatmul.mubr.f32.gmra.mrb[12].mxu0 %v40_v20  ;;  %1725 = vmatprep.subr.bf16.mxu1 %v1711_v19 }
  0x9e   :  { %918 = vmatmul.mubr.f32.gmra.mrb[12].mxu1 %v40_v20  ;;  %601 = vmatprep.mubr.f32.mxu0 %v45_v21 }
  0x9f   :  { %923 = vmatprep.mubr.f32.mxu1 %v45_v21  ;;  %1714 = vmatpush3.bf16.msra.mxu0 %v1713_v41 }
  0xa0   :  { %1733 = vmatpush3.bf16.msra.mxu1 %v1713_v41  ;;  %1716 = vmatprep.subr.bf16.mxu0 %v1715_v44 }
  0xa1   :  { %602 = vmatmul.mubr.f32.gmra.mrb[14].mxu0 %v44_v22  ;;  %1726 = vmatprep.subr.bf16.mxu1 %v1715_v44 }
  0xa2   :  { %924 = vmatmul.mubr.f32.gmra.mrb[14].mxu1 %v44_v22  ;;  %607 = vmatprep.mubr.f32.mxu0 %v49_v23 }
  0xa3   :  { %929 = vmatprep.mubr.f32.mxu1 %v49_v23  ;;  %1718 = vmatpush3.bf16.msra.mxu0 %v1717_v47 }
  0xa4   :  { %1734 = vmatpush3.bf16.msra.mxu1 %v1717_v47 }
  0xa5   :  { %608 = vmatmul.mubr.f32.gmra.mrb[16].mxu0 %v48_v24 }
  0xa6   :  { %930 = vmatmul.mubr.f32.gmra.mrb[16].mxu1 %v48_v24  ;;  %613 = vmatprep.mubr.f32.mxu0 %v53_v25 }
  0xa7   :  { %935 = vmatprep.mubr.f32.mxu1 %v53_v25 }
  0xa9   :  { %614 = vmatmul.mubr.f32.gmra.mrb[18].mxu0 %v52_v26 }
  0xaa   :  { %936 = vmatmul.mubr.f32.gmra.mrb[18].mxu1 %v52_v26  ;;  %619 = vmatprep.mubr.f32.mxu0 %v57_v27 }
  0xab   :  { %941 = vmatprep.mubr.f32.mxu1 %v57_v27 }
  0xad   :  { %620 = vmatmul.mubr.f32.gmra.mrb[20].mxu0 %v56_v28 }
  0xae   :  { %942 = vmatmul.mubr.f32.gmra.mrb[20].mxu1 %v56_v28  ;;  %625 = vmatprep.mubr.f32.mxu0 %v61_v29 }
  0xaf   :  { %947 = vmatprep.mubr.f32.mxu1 %v61_v29 }
  0xb1   :  { %626 = vmatmul.mubr.f32.gmra.mrb[22].mxu0 %v60_v30 }
  0xb2   :  { %948 = vmatmul.mubr.f32.gmra.mrb[22].mxu1 %v60_v30  ;;  %631 = vmatprep.mubr.f32.mxu0 %v65_v31 }
  0xb3   :  { %953 = vmatprep.mubr.f32.mxu1 %v65_v31 }
  0xb5   :  { %632 = vmatmul.mubr.f32.gmra.mrb[24].mxu0 %v64_v32 }
  0xb6   :  { %954 = vmatmul.mubr.f32.gmra.mrb[24].mxu1 %v64_v32  ;;  %637 = vmatprep.mubr.f32.mxu0 %v69_v33 }
  0xb7   :  { %959 = vmatprep.mubr.f32.mxu1 %v69_v33 }
  0xb9   :  { %638 = vmatmul.mubr.f32.gmra.mrb[26].mxu0 %v68_v34 }
  0xba   :  { %960 = vmatmul.mubr.f32.gmra.mrb[26].mxu1 %v68_v34  ;;  %643 = vmatprep.mubr.f32.mxu0 %v73_v35 }
  0xbb   :  { %965 = vmatprep.mubr.f32.mxu1 %v73_v35 }
  0xbd   :  { %644 = vmatmul.mubr.f32.gmra.mrb[28].mxu0 %v72_v36 }
  0xbe   :  { %966 = vmatmul.mubr.f32.gmra.mrb[28].mxu1 %v72_v36  ;;  %649 = vmatprep.mubr.f32.mxu0 %v77_v37 }
  0xbf   :  { %971 = vmatprep.mubr.f32.mxu1 %v77_v37 }
  0xc1   :  { %650 = vmatmul.mubr.f32.gmra.mrb[30].mxu0 %v76_v38 }
  0xc2   :  { %972 = vmatmul.mubr.f32.gmra.mrb[30].mxu1 %v76_v38 }
 0x158   :  { %v561_v48 = vpop.f32.mrb[0].mxu0 }
 0x159   :  { %v978_v49 = vmul.f32 %v561_v48, %v561_v48  ;;  %v883_v50 = vpop.f32.mrb[0].mxu1  ;;  %v563_v51 = vpop.f32.mrb[1].mxu0 }
 0x15a   :  { %v1010_v52 = vmul.f32 %v883_v50, %v883_v50  ;;  %v979_v53 = vmul.f32 %v563_v51, %v563_v51  ;;  %v885_v54 = vpop.f32.mrb[1].mxu1 }
 0x15b   :  { %v1011_v55 = vmul.f32 %v885_v54, %v885_v54 }
 0x15c   :  { %v1042_v56 = vadd.f32 %v1010_v52, %v978_v49  ;;  %v567_v57 = vpop.f32.mrb[2].mxu0 }
 0x15d   :  { %v1043_v58 = vadd.f32 %v1011_v55, %v979_v53  ;;  %v980_v59 = vmul.f32 %v567_v57, %v567_v57  ;;  %v889_v60 = vpop.f32.mrb[2].mxu1  ;;  %v569_v61 = vpop.f32.mrb[3].mxu0 }
 0x15e   :  { %v1012_v62 = vmul.f32 %v889_v60, %v889_v60  ;;  %v981_v63 = vmul.f32 %v569_v61, %v569_v61  ;;  %v891_v0 = vpop.f32.mrb[3].mxu1 }
 0x15f   :  { %v1013_v1 = vmul.f32 %v891_v0, %v891_v0  ;;  %1170 = vmatprep.mubr.f32.mxu0 %v1043_v58 }
 0x160   :  { %v1044_v2 = vadd.f32 %v1012_v62, %v980_v59  ;;  %1171 = vmatmul.mubr.f32.vlgmr.msra.gmra.mrb[32].mxu0 %v1042_v56  ;;  %v573_v3 = vpop.f32.mrb[4].mxu0 }
 0x161   :  { %v1045_v4 = vadd.f32 %v1013_v1, %v981_v63  ;;  %v982_v5 = vmul.f32 %v573_v3, %v573_v3  ;;  %v895_v6 = vpop.f32.mrb[4].mxu1  ;;  %v575_v7 = vpop.f32.mrb[5].mxu0 }
 0x162   :  { %v1014_v8 = vmul.f32 %v895_v6, %v895_v6  ;;  %v983_v9 = vmul.f32 %v575_v7, %v575_v7  ;;  %v897_v10 = vpop.f32.mrb[5].mxu1 }
 0x163   :  { %v1015_v11 = vmul.f32 %v897_v10, %v897_v10  ;;  %1175 = vmatprep.mubr.f32.mxu0 %v1045_v4 }
 0x164   :  { %v1046_v12 = vadd.f32 %v1014_v8, %v982_v5  ;;  %1176 = vmatmul.mubr.f32.gmra.mrb[34].mxu0 %v1044_v2  ;;  %v579_v13 = vpop.f32.mrb[6].mxu0 }
 0x165   :  { %v1047_v14 = vadd.f32 %v1015_v11, %v983_v9  ;;  %v984_v15 = vmul.f32 %v579_v13, %v579_v13  ;;  %v901_v16 = vpop.f32.mrb[6].mxu1  ;;  %v581_v17 = vpop.f32.mrb[7].mxu0 }
 0x166   :  { %v1016_v18 = vmul.f32 %v901_v16, %v901_v16  ;;  %v985_v19 = vmul.f32 %v581_v17, %v581_v17  ;;  %v903_v20 = vpop.f32.mrb[7].mxu1 }
 0x167   :  { %v1017_v21 = vmul.f32 %v903_v20, %v903_v20  ;;  %1180 = vmatprep.mubr.f32.mxu0 %v1047_v14 }
 0x168   :  { %v1048_v22 = vadd.f32 %v1016_v18, %v984_v15  ;;  %1181 = vmatmul.mubr.f32.gmra.mrb[36].mxu0 %v1046_v12  ;;  %v585_v23 = vpop.f32.mrb[8].mxu0 }
 0x169   :  { %v1049_v24 = vadd.f32 %v1017_v21, %v985_v19  ;;  %v986_v25 = vmul.f32 %v585_v23, %v585_v23  ;;  %v907_v26 = vpop.f32.mrb[8].mxu1  ;;  %v587_v27 = vpop.f32.mrb[9].mxu0 }
 0x16a   :  { %v1018_v28 = vmul.f32 %v907_v26, %v907_v26  ;;  %v987_v29 = vmul.f32 %v587_v27, %v587_v27  ;;  %v909_v30 = vpop.f32.mrb[9].mxu1 }
 0x16b   :  { %v1019_v31 = vmul.f32 %v909_v30, %v909_v30  ;;  %1185 = vmatprep.mubr.f32.mxu0 %v1049_v24 }
 0x16c   :  { %v1050_v32 = vadd.f32 %v1018_v28, %v986_v25  ;;  %1186 = vmatmul.mubr.f32.gmra.mrb[38].mxu0 %v1048_v22  ;;  %v591_v33 = vpop.f32.mrb[10].mxu0 }
 0x16d   :  { %v1051_v34 = vadd.f32 %v1019_v31, %v987_v29  ;;  %v988_v35 = vmul.f32 %v591_v33, %v591_v33  ;;  %v913_v36 = vpop.f32.mrb[10].mxu1  ;;  %v593_v37 = vpop.f32.mrb[11].mxu0 }
 0x16e   :  { %v1020_v38 = vmul.f32 %v913_v36, %v913_v36  ;;  %v989_v39 = vmul.f32 %v593_v37, %v593_v37  ;;  %v915_v40 = vpop.f32.mrb[11].mxu1 }
 0x16f   :  { %v1021_v41 = vmul.f32 %v915_v40, %v915_v40  ;;  %1190 = vmatprep.mubr.f32.mxu0 %v1051_v34 }
 0x170   :  { %v1052_v42 = vadd.f32 %v1020_v38, %v988_v35  ;;  %1191 = vmatmul.mubr.f32.gmra.mrb[40].mxu0 %v1050_v32  ;;  %v597_v43 = vpop.f32.mrb[12].mxu0 }
 0x171   :  { %v1053_v44 = vadd.f32 %v1021_v41, %v989_v39  ;;  %v990_v45 = vmul.f32 %v597_v43, %v597_v43  ;;  %v919_v46 = vpop.f32.mrb[12].mxu1  ;;  %v599_v47 = vpop.f32.mrb[13].mxu0 }
 0x172   :  { %v1022_v48 = vmul.f32 %v919_v46, %v919_v46  ;;  %v991_v49 = vmul.f32 %v599_v47, %v599_v47  ;;  %v921_v50 = vpop.f32.mrb[13].mxu1 }
 0x173   :  { %v1023_v51 = vmul.f32 %v921_v50, %v921_v50  ;;  %1195 = vmatprep.mubr.f32.mxu0 %v1053_v44 }
 0x174   :  { %v1054_v52 = vadd.f32 %v1022_v48, %v990_v45  ;;  %1196 = vmatmul.mubr.f32.gmra.mrb[42].mxu0 %v1052_v42  ;;  %v603_v53 = vpop.f32.mrb[14].mxu0 }
 0x175   :  { %v1055_v54 = vadd.f32 %v1023_v51, %v991_v49  ;;  %v992_v55 = vmul.f32 %v603_v53, %v603_v53  ;;  %v925_v56 = vpop.f32.mrb[14].mxu1  ;;  %v605_v57 = vpop.f32.mrb[15].mxu0 }
 0x176   :  { %v1024_v58 = vmul.f32 %v925_v56, %v925_v56  ;;  %v993_v59 = vmul.f32 %v605_v57, %v605_v57  ;;  %v927_v60 = vpop.f32.mrb[15].mxu1 }
 0x177   :  { %v1025_v61 = vmul.f32 %v927_v60, %v927_v60  ;;  %1200 = vmatprep.mubr.f32.mxu0 %v1055_v54 }
 0x178   :  { %v1056_v62 = vadd.f32 %v1024_v58, %v992_v55  ;;  %1201 = vmatmul.mubr.f32.gmra.mrb[44].mxu0 %v1054_v52  ;;  %v609_v63 = vpop.f32.mrb[16].mxu0 }
 0x179   :  { %v1057_v0 = vadd.f32 %v1025_v61, %v993_v59  ;;  %v994_v1 = vmul.f32 %v609_v63, %v609_v63  ;;  %v931_v2 = vpop.f32.mrb[16].mxu1  ;;  %v611_v3 = vpop.f32.mrb[17].mxu0 }
 0x17a   :  { %v1026_v4 = vmul.f32 %v931_v2, %v931_v2  ;;  %v995_v5 = vmul.f32 %v611_v3, %v611_v3  ;;  %v933_v6 = vpop.f32.mrb[17].mxu1 }
 0x17b   :  { %v1027_v7 = vmul.f32 %v933_v6, %v933_v6  ;;  %1205 = vmatprep.mubr.f32.mxu0 %v1057_v0 }
 0x17c   :  { %v1058_v8 = vadd.f32 %v1026_v4, %v994_v1  ;;  %1206 = vmatmul.mubr.f32.gmra.mrb[46].mxu0 %v1056_v62  ;;  %v615_v9 = vpop.f32.mrb[18].mxu0 }
 0x17d   :  { %v1059_v10 = vadd.f32 %v1027_v7, %v995_v5  ;;  %v996_v11 = vmul.f32 %v615_v9, %v615_v9  ;;  %v937_v12 = vpop.f32.mrb[18].mxu1  ;;  %v617_v13 = vpop.f32.mrb[19].mxu0 }
 0x17e   :  { %v1028_v14 = vmul.f32 %v937_v12, %v937_v12  ;;  %v997_v15 = vmul.f32 %v617_v13, %v617_v13  ;;  %v939_v16 = vpop.f32.mrb[19].mxu1 }
 0x17f   :  { %v1029_v17 = vmul.f32 %v939_v16, %v939_v16  ;;  %1210 = vmatprep.mubr.f32.mxu1 %v1059_v10 }
 0x180   :  { %v1060_v18 = vadd.f32 %v1028_v14, %v996_v11  ;;  %1211 = vmatmul.mubr.f32.vlgmr.msra.gmra.mrb[32].mxu1 %v1058_v8  ;;  %v621_v19 = vpop.f32.mrb[20].mxu0 }
 0x181   :  { %v1061_v20 = vadd.f32 %v1029_v17, %v997_v15  ;;  %v998_v21 = vmul.f32 %v621_v19, %v621_v19  ;;  %v943_v22 = vpop.f32.mrb[20].mxu1  ;;  %v623_v23 = vpop.f32.mrb[21].mxu0 }
 0x182   :  { %v1030_v24 = vmul.f32 %v943_v22, %v943_v22  ;;  %v999_v25 = vmul.f32 %v623_v23, %v623_v23  ;;  %v945_v26 = vpop.f32.mrb[21].mxu1 }
 0x183   :  { %v1031_v27 = vmul.f32 %v945_v26, %v945_v26  ;;  %1215 = vmatprep.mubr.f32.mxu1 %v1061_v20 }
 0x184   :  { %v1062_v28 = vadd.f32 %v1030_v24, %v998_v21  ;;  %1216 = vmatmul.mubr.f32.gmra.mrb[34].mxu1 %v1060_v18  ;;  %v627_v29 = vpop.f32.mrb[22].mxu0 }
 0x185   :  { %v1063_v30 = vadd.f32 %v1031_v27, %v999_v25  ;;  %v1000_v31 = vmul.f32 %v627_v29, %v627_v29  ;;  %v949_v32 = vpop.f32.mrb[22].mxu1  ;;  %v629_v33 = vpop.f32.mrb[23].mxu0 }
 0x186   :  { %v1032_v34 = vmul.f32 %v949_v32, %v949_v32  ;;  %v1001_v35 = vmul.f32 %v629_v33, %v629_v33  ;;  %v951_v36 = vpop.f32.mrb[23].mxu1 }
 0x187   :  { %v1033_v37 = vmul.f32 %v951_v36, %v951_v36  ;;  %1220 = vmatprep.mubr.f32.mxu1 %v1063_v30 }
 0x188   :  { %v1064_v38 = vadd.f32 %v1032_v34, %v1000_v31  ;;  %1221 = vmatmul.mubr.f32.gmra.mrb[36].mxu1 %v1062_v28  ;;  %v633_v39 = vpop.f32.mrb[24].mxu0 }
 0x189   :  { %v1065_v40 = vadd.f32 %v1033_v37, %v1001_v35  ;;  %v1002_v41 = vmul.f32 %v633_v39, %v633_v39  ;;  %v955_v42 = vpop.f32.mrb[24].mxu1  ;;  %v635_v43 = vpop.f32.mrb[25].mxu0 }
 0x18a   :  { %v1034_v44 = vmul.f32 %v955_v42, %v955_v42  ;;  %v1003_v45 = vmul.f32 %v635_v43, %v635_v43  ;;  %v957_v46 = vpop.f32.mrb[25].mxu1 }
 0x18b   :  { %v1035_v47 = vmul.f32 %v957_v46, %v957_v46  ;;  %1225 = vmatprep.mubr.f32.mxu1 %v1065_v40 }
 0x18c   :  { %v1066_v48 = vadd.f32 %v1034_v44, %v1002_v41  ;;  %1226 = vmatmul.mubr.f32.gmra.mrb[38].mxu1 %v1064_v38  ;;  %v639_v49 = vpop.f32.mrb[26].mxu0 }
 0x18d   :  { %v1067_v50 = vadd.f32 %v1035_v47, %v1003_v45  ;;  %v1004_v51 = vmul.f32 %v639_v49, %v639_v49  ;;  %v961_v52 = vpop.f32.mrb[26].mxu1  ;;  %v641_v53 = vpop.f32.mrb[27].mxu0 }
 0x18e   :  { %v1036_v54 = vmul.f32 %v961_v52, %v961_v52  ;;  %v1005_v55 = vmul.f32 %v641_v53, %v641_v53  ;;  %v963_v56 = vpop.f32.mrb[27].mxu1 }
 0x18f   :  { %v1037_v57 = vmul.f32 %v963_v56, %v963_v56  ;;  %1230 = vmatprep.mubr.f32.mxu1 %v1067_v50 }
 0x190   :  { %v1068_v58 = vadd.f32 %v1036_v54, %v1004_v51  ;;  %1231 = vmatmul.mubr.f32.gmra.mrb[40].mxu1 %v1066_v48  ;;  %v645_v59 = vpop.f32.mrb[28].mxu0 }
 0x191   :  { %v1069_v60 = vadd.f32 %v1037_v57, %v1005_v55  ;;  %v1006_v61 = vmul.f32 %v645_v59, %v645_v59  ;;  %v967_v62 = vpop.f32.mrb[28].mxu1  ;;  %v647_v63 = vpop.f32.mrb[29].mxu0 }
 0x192   :  { %v1038_v0 = vmul.f32 %v967_v62, %v967_v62  ;;  %v1007_v1 = vmul.f32 %v647_v63, %v647_v63  ;;  %v969_v2 = vpop.f32.mrb[29].mxu1 }
 0x193   :  { %v1039_v3 = vmul.f32 %v969_v2, %v969_v2  ;;  %1235 = vmatprep.mubr.f32.mxu1 %v1069_v60 }
 0x194   :  { %v1070_v4 = vadd.f32 %v1038_v0, %v1006_v61  ;;  %1236 = vmatmul.mubr.f32.gmra.mrb[42].mxu1 %v1068_v58  ;;  %v651_v5 = vpop.f32.mrb[30].mxu0 }
 0x195   :  { %v1071_v6 = vadd.f32 %v1039_v3, %v1007_v1  ;;  %v1008_v7 = vmul.f32 %v651_v5, %v651_v5  ;;  %v973_v8 = vpop.f32.mrb[30].mxu1  ;;  %v653_v9 = vpop.f32.mrb[31].mxu0 }
 0x196   :  { %v1040_v10 = vmul.f32 %v973_v8, %v973_v8  ;;  %v1009_v11 = vmul.f32 %v653_v9, %v653_v9  ;;  %v975_v12 = vpop.f32.mrb[31].mxu1 }
 0x197   :  { %v1041_v13 = vmul.f32 %v975_v12, %v975_v12  ;;  %1240 = vmatprep.mubr.f32.mxu1 %v1071_v6 }
 0x198   :  { %v1072_v14 = vadd.f32 %v1040_v10, %v1008_v7  ;;  %1241 = vmatmul.mubr.f32.gmra.mrb[44].mxu1 %v1070_v4 }
 0x199   :  { %v1073_v15 = vadd.f32 %v1041_v13, %v1009_v11 }
 0x19b   :  { %1245 = vmatprep.mubr.f32.mxu1 %v1073_v15 }
 0x19c   :  { %1246 = vmatmul.mubr.f32.gmra.mrb[46].mxu1 %v1072_v14 }
 0x233   :  { %v1383_v16 = vpop.f32.mrb[32].mxu0 }
 0x234   :  { %v1384_v17 = vpop.f32.mrb[33].mxu0 }
 0x235   :  { %v1385_v18 = vadd.f32 %v1384_v17, %v1383_v16 }
 0x237   :  { %v1251_v19 = vmax.f32 %v1385_v18, 1e-10  ;;  %v1386_v20 = vpop.f32.mrb[34].mxu0 }
 0x238   :  { %v1387_v21 = vpop.f32.mrb[35].mxu0 }
 0x239   :  { %1799 = vlog2.f32 %v1251_v19  ;;  %v1388_v22 = vadd.f32 %v1387_v21, %v1386_v20 }
 0x23b   :  { %v1252_v23 = vmax.f32 %v1388_v22, 1e-10  ;;  %v1389_v24 = vpop.f32.mrb[36].mxu0 }
 0x23c   :  { %v1390_v25 = vpop.f32.mrb[37].mxu0 }
 0x23d   :  { %1801 = vlog2.f32 %v1252_v23  ;;  %v1391_v26 = vadd.f32 %v1390_v25, %v1389_v24 }
 0x23f   :  { %v1253_v27 = vmax.f32 %v1391_v26, 1e-10  ;;  %v1392_v28 = vpop.f32.mrb[38].mxu0 }
 0x240   :  { %v1393_v29 = vpop.f32.mrb[39].mxu0 }
 0x241   :  { %1803 = vlog2.f32 %v1253_v27  ;;  %v1394_v30 = vadd.f32 %v1393_v29, %v1392_v28 }
 0x243   :  { %v1800_v31 = vpop.eup %1799  ;;  %v1254_v32 = vmax.f32 %v1394_v30, 1e-10  ;;  %v1395_v33 = vpop.f32.mrb[40].mxu0 }
 0x244   :  { %v1268_v34 = vmul.f32 0.6931472, %v1800_v31  ;;  %v1396_v35 = vpop.f32.mrb[41].mxu0 }
 0x245   :  { %1805 = vlog2.f32 %v1254_v32  ;;  %v1397_v36 = vadd.f32 %v1396_v35, %v1395_v33 }
 0x246   :  { %v1299_v37 = vmul.f32 0.4342945, %v1268_v34 }
 0x247   :  { %v1802_v38 = vpop.eup %1801  ;;  %v1255_v39 = vmax.f32 %v1397_v36, 1e-10  ;;  %v1398_v40 = vpop.f32.mrb[42].mxu0 }
 0x248   :  { %v1315_v41 = vmul.f32 10.0, %v1299_v37  ;;  %v1270_v42 = vmul.f32 0.6931472, %v1802_v38  ;;  %v1399_v43 = vpop.f32.mrb[43].mxu0 }
 0x249   :  { %1807 = vlog2.f32 %v1255_v39  ;;  %v1400_v44 = vadd.f32 %v1399_v43, %v1398_v40 }
 0x24a   :  { %1331 = vst [vmem:[%s2958_s3] sm:$0xff] %v1315_v41  ;;  %v1300_v45 = vmul.f32 0.4342945, %v1270_v42 }
 0x24b   :  { %v1804_v46 = vpop.eup %1803  ;;  %v1256_v47 = vmax.f32 %v1400_v44, 1e-10  ;;  %v1401_v48 = vpop.f32.mrb[44].mxu0 }
 0x24c   :  { %v1316_v49 = vmul.f32 10.0, %v1300_v45  ;;  %v1272_v50 = vmul.f32 0.6931472, %v1804_v46  ;;  %v1402_v51 = vpop.f32.mrb[45].mxu0 }
 0x24d   :  { %1809 = vlog2.f32 %v1256_v47  ;;  %v1403_v52 = vadd.f32 %v1402_v51, %v1401_v48 }
 0x24e   :  { %1332 = vst [vmem:[%s2958_s3 + $0x8] sm:$0xff] %v1316_v49  ;;  %v1301_v53 = vmul.f32 0.4342945, %v1272_v50 }
 0x24f   :  { %v1806_v54 = vpop.eup %1805  ;;  %v1257_v55 = vmax.f32 %v1403_v52, 1e-10  ;;  %v1404_v56 = vpop.f32.mrb[46].mxu0 }
 0x250   :  { %v1317_v57 = vmul.f32 10.0, %v1301_v53  ;;  %v1274_v58 = vmul.f32 0.6931472, %v1806_v54  ;;  %v1405_v59 = vpop.f32.mrb[47].mxu0 }
 0x251   :  { %1811 = vlog2.f32 %v1257_v55  ;;  %v1406_v60 = vadd.f32 %v1405_v59, %v1404_v56 }
 0x252   :  { %1333 = vst [vmem:[%s2958_s3 + $0x10] sm:$0xff] %v1317_v57  ;;  %v1302_v61 = vmul.f32 0.4342945, %v1274_v58 }
 0x253   :  { %v1808_v62 = vpop.eup %1807  ;;  %v1258_v63 = vmax.f32 %v1406_v60, 1e-10  ;;  %v1407_v0 = vpop.f32.mrb[32].mxu1 }
 0x254   :  { %v1318_v1 = vmul.f32 10.0, %v1302_v61  ;;  %v1276_v2 = vmul.f32 0.6931472, %v1808_v62  ;;  %v1408_v3 = vpop.f32.mrb[33].mxu1 }
 0x255   :  { %1813 = vlog2.f32 %v1258_v63  ;;  %v1409_v4 = vadd.f32 %v1408_v3, %v1407_v0 }
 0x256   :  { %1334 = vst [vmem:[%s2958_s3 + $0x18] sm:$0xff] %v1318_v1  ;;  %v1303_v5 = vmul.f32 0.4342945, %v1276_v2 }
 0x257   :  { %v1810_v6 = vpop.eup %1809  ;;  %v1259_v7 = vmax.f32 %v1409_v4, 1e-10  ;;  %v1410_v8 = vpop.f32.mrb[34].mxu1 }
 0x258   :  { %v1319_v9 = vmul.f32 10.0, %v1303_v5  ;;  %v1278_v10 = vmul.f32 0.6931472, %v1810_v6  ;;  %v1411_v11 = vpop.f32.mrb[35].mxu1 }
 0x259   :  { %1815 = vlog2.f32 %v1259_v7  ;;  %v1412_v12 = vadd.f32 %v1411_v11, %v1410_v8 }
 0x25a   :  { %1335 = vst [vmem:[%s2958_s3 + $0x20] sm:$0xff] %v1319_v9  ;;  %v1304_v13 = vmul.f32 0.4342945, %v1278_v10 }
 0x25b   :  { %v1812_v14 = vpop.eup %1811  ;;  %v1260_v15 = vmax.f32 %v1412_v12, 1e-10  ;;  %v1413_v16 = vpop.f32.mrb[36].mxu1 }
 0x25c   :  { %v1320_v17 = vmul.f32 10.0, %v1304_v13  ;;  %v1280_v18 = vmul.f32 0.6931472, %v1812_v14  ;;  %v1414_v19 = vpop.f32.mrb[37].mxu1 }
 0x25d   :  { %1817 = vlog2.f32 %v1260_v15  ;;  %v1415_v20 = vadd.f32 %v1414_v19, %v1413_v16 }
 0x25e   :  { %1336 = vst [vmem:[%s2958_s3 + $0x28] sm:$0xff] %v1320_v17  ;;  %v1305_v21 = vmul.f32 0.4342945, %v1280_v18 }
 0x25f   :  { %v1814_v22 = vpop.eup %1813  ;;  %v1261_v23 = vmax.f32 %v1415_v20, 1e-10  ;;  %v1416_v24 = vpop.f32.mrb[38].mxu1 }
 0x260   :  { %v1321_v25 = vmul.f32 10.0, %v1305_v21  ;;  %v1282_v26 = vmul.f32 0.6931472, %v1814_v22  ;;  %v1417_v27 = vpop.f32.mrb[39].mxu1 }
 0x261   :  { %1819 = vlog2.f32 %v1261_v23  ;;  %v1418_v28 = vadd.f32 %v1417_v27, %v1416_v24 }
 0x262   :  { %1337 = vst [vmem:[%s2958_s3 + $0x30] sm:$0xff] %v1321_v25  ;;  %v1306_v29 = vmul.f32 0.4342945, %v1282_v26 }
 0x263   :  { %v1816_v30 = vpop.eup %1815  ;;  %v1262_v31 = vmax.f32 %v1418_v28, 1e-10  ;;  %v1419_v32 = vpop.f32.mrb[40].mxu1 }
 0x264   :  { %v1322_v33 = vmul.f32 10.0, %v1306_v29  ;;  %v1284_v34 = vmul.f32 0.6931472, %v1816_v30  ;;  %v1420_v35 = vpop.f32.mrb[41].mxu1 }
 0x265   :  { %1821 = vlog2.f32 %v1262_v31  ;;  %v1421_v36 = vadd.f32 %v1420_v35, %v1419_v32 }
 0x266   :  { %1338 = vst [vmem:[%s2958_s3 + $0x38] sm:$0xff] %v1322_v33  ;;  %v1307_v37 = vmul.f32 0.4342945, %v1284_v34 }
 0x267   :  { %v1818_v38 = vpop.eup %1817  ;;  %v1263_v39 = vmax.f32 %v1421_v36, 1e-10  ;;  %v1422_v40 = vpop.f32.mrb[42].mxu1 }
 0x268   :  { %v1323_v41 = vmul.f32 10.0, %v1307_v37  ;;  %v1286_v42 = vmul.f32 0.6931472, %v1818_v38  ;;  %v1423_v43 = vpop.f32.mrb[43].mxu1 }
 0x269   :  { %1823 = vlog2.f32 %v1263_v39  ;;  %v1424_v44 = vadd.f32 %v1423_v43, %v1422_v40 }
 0x26a   :  { %1339 = vst [vmem:[%s2958_s3 + $0x40] sm:$0xff] %v1323_v41  ;;  %v1308_v45 = vmul.f32 0.4342945, %v1286_v42 }
 0x26b   :  { %v1820_v46 = vpop.eup %1819  ;;  %v1264_v47 = vmax.f32 %v1424_v44, 1e-10  ;;  %v1425_v48 = vpop.f32.mrb[44].mxu1 }
 0x26c   :  { %v1324_v49 = vmul.f32 10.0, %v1308_v45  ;;  %v1288_v50 = vmul.f32 0.6931472, %v1820_v46  ;;  %v1426_v51 = vpop.f32.mrb[45].mxu1 }
 0x26d   :  { %1825 = vlog2.f32 %v1264_v47  ;;  %v1427_v52 = vadd.f32 %v1426_v51, %v1425_v48 }
 0x26e   :  { %1340 = vst [vmem:[%s2958_s3 + $0x48] sm:$0xff] %v1324_v49  ;;  %v1309_v53 = vmul.f32 0.4342945, %v1288_v50 }
 0x26f   :  { %v1822_v54 = vpop.eup %1821  ;;  %v1265_v55 = vmax.f32 %v1427_v52, 1e-10  ;;  %v1428_v56 = vpop.f32.mrb[46].mxu1 }
 0x270   :  { %v1325_v57 = vmul.f32 10.0, %v1309_v53  ;;  %v1290_v58 = vmul.f32 0.6931472, %v1822_v54  ;;  %v1429_v59 = vpop.f32.mrb[47].mxu1 }
 0x271   :  { %1827 = vlog2.f32 %v1265_v55  ;;  %v1430_v60 = vadd.f32 %v1429_v59, %v1428_v56 }
 0x272   :  { %1341 = vst [vmem:[%s2958_s3 + $0x50] sm:$0xff] %v1325_v57  ;;  %v1310_v61 = vmul.f32 0.4342945, %v1290_v58 }
 0x273   :  { %v1824_v62 = vpop.eup %1823  ;;  %v1266_v63 = vmax.f32 %v1430_v60, 1e-10 }
 0x274   :  { %v1326_v0 = vmul.f32 10.0, %v1310_v61  ;;  %v1292_v1 = vmul.f32 0.6931472, %v1824_v62 }
 0x275   :  { %1829 = vlog2.f32 %v1266_v63 }
 0x276   :  { %1342 = vst [vmem:[%s2958_s3 + $0x58] sm:$0xff] %v1326_v0  ;;  %v1311_v2 = vmul.f32 0.4342945, %v1292_v1 }
 0x277   :  { %v1826_v3 = vpop.eup %1825 }
 0x278   :  { %v1327_v4 = vmul.f32 10.0, %v1311_v2  ;;  %v1294_v5 = vmul.f32 0.6931472, %v1826_v3 }
 0x27a   :  { %1343 = vst [vmem:[%s2958_s3 + $0x60] sm:$0xff] %v1327_v4  ;;  %v1312_v6 = vmul.f32 0.4342945, %v1294_v5 }
 0x27b   :  { %v1828_v7 = vpop.eup %1827 }
 0x27c   :  { %v1328_v8 = vmul.f32 10.0, %v1312_v6  ;;  %v1296_v9 = vmul.f32 0.6931472, %v1828_v7 }
 0x27e   :  { %1344 = vst [vmem:[%s2958_s3 + $0x68] sm:$0xff] %v1328_v8  ;;  %v1313_v10 = vmul.f32 0.4342945, %v1296_v9 }
 0x27f   :  { %v1830_v11 = vpop.eup %1829 }
 0x280   :  { %v1329_v12 = vmul.f32 10.0, %v1313_v10  ;;  %v1298_v13 = vmul.f32 0.6931472, %v1830_v11 }
 0x282   :  { %1345 = vst [vmem:[%s2958_s3 + $0x70] sm:$0xff] %v1329_v12  ;;  %v1314_v14 = vmul.f32 0.4342945, %v1298_v13 }
 0x284   :  { %v1330_v15 = vmul.f32 10.0, %v1314_v14 }
 0x286   :  { %1346 = vst [vmem:[%s2958_s3 + $0x78] sm:$0xff] %v1330_v15 }

</bundles_post_ra>
